<compile_context>
chip_gen: v5e
topology: v5e:2x2
jax: 0.10.0
libtpu: 0.0.40
codegen_flags: <defaults>
</compile_context>

<pallas_src>
import functools

import jax
import jax.numpy as jnp
from jax.experimental import pallas as pl
from jax.experimental.pallas import tpu as pltpu

FEAT_DIM = 512     # backbone output / projection head input
HIDDEN_DIM = 512   # projection head hidden
OUT_DIM = 128      # projection head output
BN_EPS = 1e-5


def _round_up(x, m):
    return -(-x // m) * m


# ----------------------------------------------------------------------------- kernel A
def _gap_kernel(x_ref, wc_ref, h_ref, acc_ref, *, S, TS):
    """Streaming GAP over spatial tiles + fused 1x1-conv projection to FEAT_DIM.

    x_ref:  [TN, C, TS] input dtype (spatial tile; tail columns masked in-kernel)
    wc_ref: [C, FEAT_DIM] f32 (already scaled by 1/(H*W) on the host)
    h_ref:  [TN, FEAT_DIM] f32 output (written once, at the last spatial tile)
    acc_ref:[TN, C] f32 scratch accumulator of raw spatial sums
    """
    k = pl.program_id(1)

    @pl.when(k == 0)
    def _():
        acc_ref[...] = jnp.zeros_like(acc_ref)

    # Upcast to f32 before the VPU reduction; the 1/(H*W) mean scale is folded into wc.
    x = x_ref[...].astype(jnp.float32)
    if S % TS != 0:
        # Mask the spatial tail with a select (safe even if the OOB read is NaN garbage).
        lane = jax.lax.broadcasted_iota(jnp.int32, x.shape, 2)
        x = jnp.where(k * TS + lane < S, x, 0.0)
    acc_ref[...] += jnp.sum(x, axis=-1)

    @pl.when(k == pl.num_programs(1) - 1)
    def _():
        h_ref[...] = jnp.dot(acc_ref[...], wc_ref[...],
                             preferred_element_type=jnp.float32)


# ----------------------------------------------------------------------------- kernel B
def _head_kernel(n_real, h_ref, w1_ref, gamma_ref, beta_ref, w2_ref, b2_ref, z_ref):
    """SimCLR projection head on the (sublane-padded) features.

    h_ref: [N_pad, 512] f32; rows >= n_real are zero padding and are masked out of BN stats.
    """
    h = h_ref[...].astype(jnp.bfloat16)

    # Linear(512, 512, bias=False)
    p = jnp.dot(h, w1_ref[...], preferred_element_type=jnp.float32)   # [N_pad, 512] f32

    # BatchNorm1d(512), training-mode batch statistics (biased variance) over the REAL rows.
    row_ids = jax.lax.broadcasted_iota(jnp.int32, (p.shape[0], 1), 0)
    valid = (row_ids < n_real).astype(jnp.float32)                    # [N_pad, 1]
    inv_n = jnp.float32(1.0 / n_real)
    mu = jnp.sum(p * valid, axis=0, keepdims=True) * inv_n            # [1, 512]
    d = (p - mu) * valid
    var = jnp.sum(d * d, axis=0, keepdims=True) * inv_n               # [1, 512]

    # Fold BN into one scale/shift (rsqrt lands on the EUP slot).
    scale = gamma_ref[...] * jax.lax.rsqrt(var + BN_EPS)
    shift = beta_ref[...] - mu * scale

    # ReLU
    a = jnp.maximum(p * scale + shift, 0.0)

    # Linear(512, 128, bias=True)
    z = jnp.dot(a.astype(jnp.bfloat16), w2_ref[...],
                preferred_element_type=jnp.float32) + b2_ref[...]

    z_ref[...] = z.astype(z_ref.dtype)


# ----------------------------------------------------------------------------- wrapper
@jax.jit
def simclr_forward(x_nchw, params):
    """x_nchw: [N, C, H, W] float32. Returns z: [N, 128] float32."""
    N, C, H, W = x_nchw.shape
    S = H * W
    x = x_nchw.reshape(N, C, S)          # free view, no HBM copy

    # --- batch tile for the streaming GAP kernel (parallel axis -> megacore) ---
    TN = N if N <= 128 else 128

    # --- spatial tile: lane-aligned, clamped so the double-buffered x block fits VMEM ---
    itemsize = jnp.dtype(x.dtype).itemsize
    TS = min(_round_up(S, 128), 2048)
    vmem_budget = 4 * 1024 * 1024        # per x buffer (x is double-buffered by Pallas)
    max_ts = max(128, (vmem_budget // max(1, TN * C * itemsize)) // 128 * 128)
    TS = max(128, min(TS, max_ts))

    # Fold the 1/(H*W) GAP scale into the synthetic 1x1-conv weight.
    wc_scaled = params["w_conv"].astype(jnp.float32) * jnp.float32(1.0 / S)

    grid_a = (pl.cdiv(N, TN), pl.cdiv(S, TS))
    h = pl.pallas_call(
        functools.partial(_gap_kernel, S=S, TS=TS),
        grid=grid_a,
        in_specs=[
            pl.BlockSpec((TN, C, TS), lambda i, k: (i, 0, k)),
            # weights: constant index_map -> VMEM-resident, not re-DMA'd per step
            pl.BlockSpec((C, FEAT_DIM), lambda i, k: (0, 0)),
        ],
        out_specs=pl.BlockSpec((TN, FEAT_DIM), lambda i, k: (i, 0)),
        out_shape=jax.ShapeDtypeStruct((N, FEAT_DIM), jnp.float32),
        scratch_shapes=[pltpu.VMEM((TN, C), jnp.float32)],
        compiler_params=pltpu.CompilerParams(
            dimension_semantics=("parallel", "arbitrary"),
        ),
    )(x, wc_scaled)

    # --- projection head: pad batch only to a sublane multiple (cheap [N,512] pad) ---
    N_pad = _round_up(max(N, 8), 8)
    if N_pad != N:
        h = jnp.pad(h, ((0, N_pad - N), (0, 0)))

    z = pl.pallas_call(
        functools.partial(_head_kernel, N),
        grid=(1,),
        in_specs=[
            pl.BlockSpec((N_pad, FEAT_DIM), lambda i: (0, 0)),
            pl.BlockSpec((FEAT_DIM, HIDDEN_DIM), lambda i: (0, 0)),
            pl.BlockSpec((1, HIDDEN_DIM), lambda i: (0, 0)),
            pl.BlockSpec((1, HIDDEN_DIM), lambda i: (0, 0)),
            pl.BlockSpec((HIDDEN_DIM, OUT_DIM), lambda i: (0, 0)),
            pl.BlockSpec((1, OUT_DIM), lambda i: (0, 0)),
        ],
        out_specs=pl.BlockSpec((N_pad, OUT_DIM), lambda i: (0, 0)),
        out_shape=jax.ShapeDtypeStruct((N_pad, OUT_DIM), jnp.float32),
        compiler_params=pltpu.CompilerParams(
            dimension_semantics=("arbitrary",),
        ),
    )(h, params["w1"].astype(jnp.bfloat16), params["bn_gamma"], params["bn_beta"],
      params["w2"].astype(jnp.bfloat16), params["b2"])

    return z[:N]


def init_params(key, in_channels):
    k0, k1, k2, k3 = jax.random.split(key, 4)
    scale_c = 1.0 / jnp.sqrt(jnp.float32(in_channels))
    scale_1 = 1.0 / jnp.sqrt(jnp.float32(FEAT_DIM))
    scale_2 = 1.0 / jnp.sqrt(jnp.float32(HIDDEN_DIM))
    return {
        # synthetic backbone: 1x1 conv weight [C_in, 512]
        "w_conv": jax.random.uniform(k0, (in_channels, FEAT_DIM), jnp.float32,
                                     -scale_c, scale_c),
        # projection head layer 1: Linear(512, 512, bias=False)
        "w1": jax.random.uniform(k1, (FEAT_DIM, HIDDEN_DIM), jnp.float32,
                                 -scale_1, scale_1),
        # BatchNorm1d(512) affine params (PyTorch init: gamma=1, beta=0)
        "bn_gamma": jnp.ones((1, HIDDEN_DIM), jnp.float32),
        "bn_beta": jnp.zeros((1, HIDDEN_DIM), jnp.float32),
        # projection head layer 2: Linear(512, 128, bias=True)
        "w2": jax.random.uniform(k2, (HIDDEN_DIM, OUT_DIM), jnp.float32,
                                 -scale_2, scale_2),
        "b2": jax.random.uniform(k3, (1, OUT_DIM), jnp.float32,
                                 -scale_2, scale_2),
    }


if __name__ == "__main__":
    key = jax.random.PRNGKey(0)
    k_x, k_p = jax.random.split(key)

    # Small, deterministic example input consistent with NCHW image batches.
    N, C, H, W = 2, 4, 16, 16
    x = jax.random.normal(k_x, (N, C, H, W), dtype=jnp.float32)
    params = init_params(k_p, C)

    z = simclr_forward(x, params)
    z = jax.block_until_ready(z)
    assert z.shape == (N, OUT_DIM) and z.dtype == jnp.float32
    assert bool(jnp.all(jnp.isfinite(z)))
    print("KERNEL_OK")
</pallas_src>

<mosaic_0001>
module attributes {stable_mosaic.version = 11 : i64} {
  func.func @_gap_kernel(%arg0: i32, %arg1: i32, %arg2: memref<2x4x256xf32, #tpu.memory_space<vmem>>, %arg3: memref<4x512xf32, #tpu.memory_space<vmem>>, %arg4: memref<2x512xf32, #tpu.memory_space<vmem>>, %arg5: memref<2x4xf32, #tpu.memory_space<vmem>>) attributes {dimension_semantics = [#tpu.dimension_semantics<parallel>, #tpu.dimension_semantics<arbitrary>], iteration_bounds = array<i64: 1, 1>, scalar_prefetch = 0 : i64, scratch_operands = 1 : i64, tpu.core_type = #tpu.core_type<tc>, window_params = [{transform_indices = @transform_0, window_bounds = array<i64: 2, 4, 256>}, {pipeline_mode = #tpu.pipeline_mode<synchronous>, transform_indices = @transform_1, window_bounds = array<i64: 4, 512>}, {transform_indices = @transform_2, window_bounds = array<i64: 2, 512>}]} {
    %c0_i32 = arith.constant 0 : i32
    %0 = arith.cmpi eq, %arg1, %c0_i32 : i32
    %1 = arith.extui %0 : i1 to i32
    %c0_i32_0 = arith.constant 0 : i32
    %2 = arith.cmpi ne, %1, %c0_i32_0 : i32
    scf.if %2 {
      %cst_9 = arith.constant 0.000000e+00 : f32
      %11 = vector.broadcast %cst_9 : f32 to vector<2x4xf32>
      %c0_10 = arith.constant 0 : index
      %c0_11 = arith.constant 0 : index
      %12 = vector.load %arg5[%c0_10, %c0_11] : memref<2x4xf32, #tpu.memory_space<vmem>>, vector<2x4xf32>
      tpu.vector_store %arg5[%c0_10, %c0_11], %11 {strides = array<i32>} : memref<2x4xf32, #tpu.memory_space<vmem>>, vector<2x4xf32>,
    } else {
    }
    %c0 = arith.constant 0 : index
    %c0_1 = arith.constant 0 : index
    %c0_2 = arith.constant 0 : index
    %3 = vector.load %arg2[%c0, %c0_1, %c0_2] : memref<2x4x256xf32, #tpu.memory_space<vmem>>, vector<2x4x256xf32>
    %c0_3 = arith.constant 0 : index
    %c0_4 = arith.constant 0 : index
    %4 = vector.load %arg5[%c0_3, %c0_4] : memref<2x4xf32, #tpu.memory_space<vmem>>, vector<2x4xf32>
    %cst = arith.constant dense<0.000000e+00> : vector<2x4xf32>
    %5 = vector.multi_reduction <add>, %3, %cst [2] : vector<2x4x256xf32> to vector<2x4xf32>
    %6 = arith.addf %4, %5 : vector<2x4xf32>
    %c0_5 = arith.constant 0 : index
    %c0_6 = arith.constant 0 : index
    %7 = vector.load %arg5[%c0_5, %c0_6] : memref<2x4xf32, #tpu.memory_space<vmem>>, vector<2x4xf32>
    tpu.vector_store %arg5[%c0_5, %c0_6], %6 {strides = array<i32>} : memref<2x4xf32, #tpu.memory_space<vmem>>, vector<2x4xf32>,
    %c0_i32_7 = arith.constant 0 : i32
    %8 = arith.cmpi eq, %arg1, %c0_i32_7 : i32
    %9 = arith.extui %8 : i1 to i32
    %c0_i32_8 = arith.constant 0 : i32
    %10 = arith.cmpi ne, %9, %c0_i32_8 : i32
    scf.if %10 {
      %c0_9 = arith.constant 0 : index
      %c0_10 = arith.constant 0 : index
      %11 = vector.load %arg5[%c0_9, %c0_10] : memref<2x4xf32, #tpu.memory_space<vmem>>, vector<2x4xf32>
      %c0_11 = arith.constant 0 : index
      %c0_12 = arith.constant 0 : index
      %12 = vector.load %arg3[%c0_11, %c0_12] : memref<4x512xf32, #tpu.memory_space<vmem>>, vector<4x512xf32>
      %cst_13 = arith.constant dense<0.000000e+00> : vector<2x512xf32>
      %13 = tpu.matmul %11, %12, %cst_13 {dimension_numbers = #tpu.dot_dimension_numbers<[1], [0], [0], [1], [0, 0, 1, 1], [], []>} : vector<2x4xf32>, vector<4x512xf32>, vector<2x512xf32> -> vector<2x512xf32>
      %c0_14 = arith.constant 0 : index
      %c0_15 = arith.constant 0 : index
      %14 = vector.load %arg4[%c0_14, %c0_15] : memref<2x512xf32, #tpu.memory_space<vmem>>, vector<2x512xf32>
      tpu.vector_store %arg4[%c0_14, %c0_15], %13 {strides = array<i32>} : memref<2x512xf32, #tpu.memory_space<vmem>>, vector<2x512xf32>,
    } else {
    }
    return
  }
  func.func @transform_0(%arg0: i32, %arg1: i32) -> (i32, i32, i32) {
    %c0_i32 = arith.constant 0 : i32
    %c0_i32_0 = arith.constant 0 : i32
    return %arg0, %c0_i32, %arg1 : i32, i32, i32
  }
  func.func @transform_1(%arg0: i32, %arg1: i32) -> (i32, i32) {
    %c0_i32 = arith.constant 0 : i32
    %c0_i32_0 = arith.constant 0 : i32
    %c0_i32_1 = arith.constant 0 : i32
    return %c0_i32, %c0_i32_0 : i32, i32
  }
  func.func @transform_2(%arg0: i32, %arg1: i32) -> (i32, i32) {
    %c0_i32 = arith.constant 0 : i32
    %c0_i32_0 = arith.constant 0 : i32
    return %arg0, %c0_i32 : i32, i32
  }
}

module attributes {stable_mosaic.version = 11 : i64} {
  func.func @_head_kernel(%arg0: i32, %arg1: memref<8x512xf32, #tpu.memory_space<vmem>>, %arg2: memref<512x512xbf16, #tpu.memory_space<vmem>>, %arg3: memref<1x512xf32, #tpu.memory_space<vmem>>, %arg4: memref<1x512xf32, #tpu.memory_space<vmem>>, %arg5: memref<512x128xbf16, #tpu.memory_space<vmem>>, %arg6: memref<1x128xf32, #tpu.memory_space<vmem>>, %arg7: memref<8x128xf32, #tpu.memory_space<vmem>>) attributes {dimension_semantics = [#tpu.dimension_semantics<arbitrary>], iteration_bounds = array<i64: 1>, scalar_prefetch = 0 : i64, scratch_operands = 0 : i64, tpu.core_type = #tpu.core_type<tc>, window_params = [{pipeline_mode = #tpu.pipeline_mode<synchronous>, transform_indices = @transform_0, window_bounds = array<i64: 8, 512>}, {pipeline_mode = #tpu.pipeline_mode<synchronous>, transform_indices = @transform_1, window_bounds = array<i64: 512, 512>}, {pipeline_mode = #tpu.pipeline_mode<synchronous>, transform_indices = @transform_2, window_bounds = array<i64: 1, 512>}, {pipeline_mode = #tpu.pipeline_mode<synchronous>, transform_indices = @transform_3, window_bounds = array<i64: 1, 512>}, {pipeline_mode = #tpu.pipeline_mode<synchronous>, transform_indices = @transform_4, window_bounds = array<i64: 512, 128>}, {pipeline_mode = #tpu.pipeline_mode<synchronous>, transform_indices = @transform_5, window_bounds = array<i64: 1, 128>}, {pipeline_mode = #tpu.pipeline_mode<synchronous>, transform_indices = @transform_6, window_bounds = array<i64: 8, 128>}]} {
    %c0 = arith.constant 0 : index
    %c0_0 = arith.constant 0 : index
    %0 = vector.load %arg1[%c0, %c0_0] : memref<8x512xf32, #tpu.memory_space<vmem>>, vector<8x512xf32>
    %1 = arith.truncf %0 : vector<8x512xf32> to vector<8x512xbf16>
    %c0_1 = arith.constant 0 : index
    %c0_2 = arith.constant 0 : index
    %2 = vector.load %arg2[%c0_1, %c0_2] : memref<512x512xbf16, #tpu.memory_space<vmem>>, vector<512x512xbf16>
    %cst = arith.constant dense<0.000000e+00> : vector<8x512xf32>
    %3 = tpu.matmul %1, %2, %cst {dimension_numbers = #tpu.dot_dimension_numbers<[1], [0], [0], [1], [0, 0, 1, 1], [], []>} : vector<8x512xbf16>, vector<512x512xbf16>, vector<8x512xf32> -> vector<8x512xf32>
    %4 = tpu.iota {dimensions = array<i32: 0>} : vector<8x1xi32>
    %c2_i32 = arith.constant 2 : i32
    %5 = vector.broadcast %c2_i32 : i32 to vector<8x1xi32>
    %6 = arith.cmpi slt, %4, %5 : vector<8x1xi32>
    %7 = arith.extui %6 : vector<8x1xi1> to vector<8x1xi32>
    %8 = arith.sitofp %7 : vector<8x1xi32> to vector<8x1xf32>
    %9 = vector.broadcast %8 : vector<8x1xf32> to vector<8x512xf32>
    %10 = arith.mulf %3, %9 : vector<8x512xf32>
    %cst_3 = arith.constant dense<0.000000e+00> : vector<512xf32>
    %11 = vector.multi_reduction <add>, %10, %cst_3 [0] : vector<8x512xf32> to vector<512xf32>
    %12 = vector.shape_cast %11 : vector<512xf32> to vector<1x512xf32>
    %cst_4 = arith.constant 5.000000e-01 : f32
    %13 = vector.broadcast %cst_4 : f32 to vector<1x512xf32>
    %14 = arith.mulf %12, %13 : vector<1x512xf32>
    %15 = vector.broadcast %14 : vector<1x512xf32> to vector<8x512xf32>
    %16 = arith.subf %3, %15 : vector<8x512xf32>
    %17 = vector.broadcast %8 : vector<8x1xf32> to vector<8x512xf32>
    %18 = arith.mulf %16, %17 : vector<8x512xf32>
    %19 = arith.mulf %18, %18 : vector<8x512xf32>
    %cst_5 = arith.constant dense<0.000000e+00> : vector<512xf32>
    %20 = vector.multi_reduction <add>, %19, %cst_5 [0] : vector<8x512xf32> to vector<512xf32>
    %21 = vector.shape_cast %20 : vector<512xf32> to vector<1x512xf32>
    %cst_6 = arith.constant 5.000000e-01 : f32
    %22 = vector.broadcast %cst_6 : f32 to vector<1x512xf32>
    %23 = arith.mulf %21, %22 : vector<1x512xf32>
    %c0_7 = arith.constant 0 : index
    %c0_8 = arith.constant 0 : index
    %24 = vector.load %arg3[%c0_7, %c0_8] : memref<1x512xf32, #tpu.memory_space<vmem>>, vector<1x512xf32>
    %cst_9 = arith.constant 9.99999974E-6 : f32
    %25 = vector.broadcast %cst_9 : f32 to vector<1x512xf32>
    %26 = arith.addf %23, %25 : vector<1x512xf32>
    %27 = math.rsqrt %26 : vector<1x512xf32>
    %28 = arith.mulf %24, %27 : vector<1x512xf32>
    %c0_10 = arith.constant 0 : index
    %c0_11 = arith.constant 0 : index
    %29 = vector.load %arg4[%c0_10, %c0_11] : memref<1x512xf32, #tpu.memory_space<vmem>>, vector<1x512xf32>
    %30 = arith.mulf %14, %28 : vector<1x512xf32>
    %31 = arith.subf %29, %30 : vector<1x512xf32>
    %32 = vector.broadcast %28 : vector<1x512xf32> to vector<8x512xf32>
    %33 = arith.mulf %3, %32 : vector<8x512xf32>
    %34 = vector.broadcast %31 : vector<1x512xf32> to vector<8x512xf32>
    %35 = arith.addf %33, %34 : vector<8x512xf32>
    %cst_12 = arith.constant 0.000000e+00 : f32
    %36 = vector.broadcast %cst_12 : f32 to vector<8x512xf32>
    %37 = arith.maximumf %35, %36 : vector<8x512xf32>
    %38 = arith.truncf %37 : vector<8x512xf32> to vector<8x512xbf16>
    %c0_13 = arith.constant 0 : index
    %c0_14 = arith.constant 0 : index
    %39 = vector.load %arg5[%c0_13, %c0_14] : memref<512x128xbf16, #tpu.memory_space<vmem>>, vector<512x128xbf16>
    %cst_15 = arith.constant dense<0.000000e+00> : vector<8x128xf32>
    %40 = tpu.matmul %38, %39, %cst_15 {dimension_numbers = #tpu.dot_dimension_numbers<[1], [0], [0], [1], [0, 0, 1, 1], [], []>} : vector<8x512xbf16>, vector<512x128xbf16>, vector<8x128xf32> -> vector<8x128xf32>
    %c0_16 = arith.constant 0 : index
    %c0_17 = arith.constant 0 : index
    %41 = vector.load %arg6[%c0_16, %c0_17] : memref<1x128xf32, #tpu.memory_space<vmem>>, vector<1x128xf32>
    %42 = vector.broadcast %41 : vector<1x128xf32> to vector<8x128xf32>
    %43 = arith.addf %40, %42 : vector<8x128xf32>
    %c0_18 = arith.constant 0 : index
    %c0_19 = arith.constant 0 : index
    %44 = vector.load %arg7[%c0_18, %c0_19] : memref<8x128xf32, #tpu.memory_space<vmem>>, vector<8x128xf32>
    tpu.vector_store %arg7[%c0_18, %c0_19], %43 {strides = array<i32>} : memref<8x128xf32, #tpu.memory_space<vmem>>, vector<8x128xf32>,
    return
  }
  func.func @transform_0(%arg0: i32) -> (i32, i32) {
    %c0_i32 = arith.constant 0 : i32
    %c0_i32_0 = arith.constant 0 : i32
    %c0_i32_1 = arith.constant 0 : i32
    return %c0_i32, %c0_i32_0 : i32, i32
  }
  func.func @transform_1(%arg0: i32) -> (i32, i32) {
    %c0_i32 = arith.constant 0 : i32
    %c0_i32_0 = arith.constant 0 : i32
    %c0_i32_1 = arith.constant 0 : i32
    return %c0_i32, %c0_i32_0 : i32, i32
  }
  func.func @transform_2(%arg0: i32) -> (i32, i32) {
    %c0_i32 = arith.constant 0 : i32
    %c0_i32_0 = arith.constant 0 : i32
    %c0_i32_1 = arith.constant 0 : i32
    return %c0_i32, %c0_i32_0 : i32, i32
  }
  func.func @transform_3(%arg0: i32) -> (i32, i32) {
    %c0_i32 = arith.constant 0 : i32
    %c0_i32_0 = arith.constant 0 : i32
    %c0_i32_1 = arith.constant 0 : i32
    return %c0_i32, %c0_i32_0 : i32, i32
  }
  func.func @transform_4(%arg0: i32) -> (i32, i32) {
    %c0_i32 = arith.constant 0 : i32
    %c0_i32_0 = arith.constant 0 : i32
    %c0_i32_1 = arith.constant 0 : i32
    return %c0_i32, %c0_i32_0 : i32, i32
  }
  func.func @transform_5(%arg0: i32) -> (i32, i32) {
    %c0_i32 = arith.constant 0 : i32
    %c0_i32_0 = arith.constant 0 : i32
    %c0_i32_1 = arith.constant 0 : i32
    return %c0_i32, %c0_i32_0 : i32, i32
  }
  func.func @transform_6(%arg0: i32) -> (i32, i32) {
    %c0_i32 = arith.constant 0 : i32
    %c0_i32_0 = arith.constant 0 : i32
    %c0_i32_1 = arith.constant 0 : i32
    return %c0_i32, %c0_i32_0 : i32, i32
  }
}

</mosaic_0001>

<bundles_post_ra>
// kernel: simclr_forward.2
= control target key start
LH: loop header
LB: loop body
LE: loop exit
PB: predicated region body
PF: predicated region fallthrough
CT: control target
= control target key end

     0   :  { %vm33_vm0 = vcmask 1043456   ;;  %vm15_vm1 = vcmask 25600   ;;  %v190_v14 = vmov 0.0   ;;  %v46_v20 = vlaneseq  ;;  %s232_s0 = inlined_call_operand.vmem [shape: f32[2,4,256], index: 0, kind: input, shape index: {}]   ;;  %s233_s1 = inlined_call_operand.vmem [shape: f32[4,512], index: 1, kind: input, shape index: {}]   ;;  %s234_s2 = inlined_call_operand.vmem [shape: f32[2,512], index: 2, kind: output, shape index: {}]  }
   0x1   :  { %v17_v0 = vld [vmem:[%s232_s0] sm:$0xff]  ;;  %v18_v1 = vld [vmem:[%s232_s0 + $0x8] sm:$0xff]  ;;  %16 = vst.msk [vmem:[#allocation2] sm:$0x3] %vm15_vm1, %v190_v14  ;;  %vm50_vm2 = vcmask 1041409   ;;  %vm71_vm3 = vcmask 31744  }
   0x2   :  { %22 = vst [vmem:[#allocation1] ss:$2 sm:$0xff] %v17_v0  ;;  %v60_v2 = vld [vmem:[%s233_s1] sm:$0xff]  ;;  %v61_v3 = vld [vmem:[%s233_s1 + $0x8] sm:$0xff]  ;;  %v47_v21 = vand.u32 127, %v46_v20  ;;  %vm170_vm4 = vcmask 1041408  }
   0x3   :  { %26 = vst [vmem:[#allocation1 + $0x10] ss:$2 sm:$0xff] %v18_v1  ;;  %vm172_vm5 = vcmask 1045508  }
   0x8   :  { %v19_v24 = vld [vmem:[#allocation2] sm:$0x3] }
   0x9   :  { %v23_v4 = vld.sshfl [vmem:[#allocation1] sm:$0xff pattern:$0x75316420]  ;;  %v24_v5 = vld.sshfl [vmem:[#allocation1 + $0x8] sm:$0xff pattern:$0x75316420] }
   0xa   :  { %v34_v6 = vsel %vm33_vm0, %v23_v4, 0.0  ;;  %v35_v7 = vsel %vm33_vm0, %v24_v5, 0.0  ;;  %64 = vst [vmem:[#allocation1] ss:$2 sm:$0xff] %v60_v2 }
   0xb   :  { %v36_v8 = vadd.f32 %v35_v7, %v34_v6  ;;  %v27_v9 = vld.sshfl [vmem:[#allocation1 + $0x10] sm:$0xff pattern:$0x75316420]  ;;  %v28_v10 = vld.sshfl [vmem:[#allocation1 + $0x18] sm:$0xff pattern:$0x75316420] }
   0xc   :  { %66 = vst [vmem:[#allocation1 + $0x10] ss:$2 sm:$0xff] %v61_v3  ;;  %v39_v11 = vsel %vm33_vm0, %v27_v9, 0.0  ;;  %v40_v12 = vsel %vm33_vm0, %v28_v10, 0.0 }
   0xd   :  { %37 = vadd.xlane.f32.xlu0 %v36_v8  ;;  %v41_v13 = vadd.f32 %v40_v12, %v39_v11 }
  0x11   :  { %v67_v15 = vld.sshfl [vmem:[#allocation1] sm:$0xff pattern:$0x75316420]  ;;  %v68_v16 = vld.sshfl [vmem:[#allocation1 + $0x8] sm:$0xff pattern:$0x75316420] }
  0x12   :  { %181 = vmatpush.msk.msra.mxu0 %vm33_vm0, %v67_v15  ;;  %183 = vmatpush.msk.msra.mxu1 %vm33_vm0, %v68_v16 }
  0x13   :  { %v69_v17 = vld.sshfl [vmem:[#allocation1 + $0x10] sm:$0xff pattern:$0x75316420]  ;;  %v70_v18 = vld.sshfl [vmem:[#allocation1 + $0x18] sm:$0xff pattern:$0x75316420] }
  0x14   :  { %185 = vmatpush.msk.msra.mxu2 %vm33_vm0, %v69_v17  ;;  %187 = vmatpush.msk.msra.mxu3 %vm33_vm0, %v70_v18 }
  0x15   :  { %42 = vadd.xlane.f32.xlu0 %v41_v13 }
  0x80   :  { %v38_v19 = vpop.xlane.xlu0 %37 }
  0x81   :  { %v48_v23 = vperm.slane %v38_v19, %v47_v21 }
  0x88   :  { %v43_v22 = vpop.xlane.xlu0 %42 }
  0x89   :  { %v49_v25 = vperm.slane %v43_v22, %v47_v21 }
  0x8b   :  { %v51_v26 = vsel %vm50_vm2, %v49_v25, %v48_v23 }
  0x8c   :  { %v53_v27 = vadd.f32 %v51_v26, %v19_v24 }
  0x8e   :  { %55 = vst.msk [vmem:[#allocation2] sm:$0x3] %vm15_vm1, %v53_v27 }
  0x95   :  { %v59_v28 = vld [vmem:[#allocation2] sm:$0x3] }
  0x96   :  { %182 = vmatmul.msk.f32.vlgmr.msra.gmra.mxu0 %vm71_vm3, %v59_v28  ;;  %184 = vmatmul.msk.f32.vlgmr.msra.gmra.mxu1 %vm71_vm3, %v59_v28 }
  0x97   :  { %186 = vmatmul.msk.f32.vlgmr.msra.gmra.mxu2 %vm71_vm3, %v59_v28  ;;  %188 = vmatmul.msk.f32.vlgmr.msra.gmra.mxu3 %vm71_vm3, %v59_v28 }
 0x113   :  { %v120_v29 = vpop.f32.mrf.mxu1  ;;  %v100_v35 = vpop.f32.mrf.mxu0 }
 0x114   :  { %v167_v30 = vrot.slane %v120_v29, 6 }
 0x116   :  { %v171_v36 = vsel %vm170_vm4, %v100_v35, %v167_v30 }
 0x11a   :  { %v140_v31 = vpop.f32.mrf.mxu2  ;;  %v160_v32 = vpop.f32.mrf.mxu3 }
 0x11b   :  { %v168_v33 = vrot.slane %v140_v31, 4  ;;  %v169_v34 = vrot.slane %v160_v32, 2 }
 0x11d   :  { %v173_v37 = vsel %vm172_vm5, %v168_v33, %v169_v34 }
 0x11e   :  { %v174_v38 = vsel %vm33_vm0, %v171_v36, %v173_v37 }
 0x11f   :  { %176 = vst [vmem:[%s234_s2] sm:$0xff] %v174_v38 }

// kernel: simclr_forward.3
= control target key start
LH: loop header
LB: loop body
LE: loop exit
PB: predicated region body
PF: predicated region fallthrough
CT: control target
= control target key end

     0   :  { %vm1136_vm12 = vcmask 1040384   ;;  %vm1138_vm13 = vcmask 1042434   ;;  %vm1140_vm15 = vcmask 1041408   ;;  %s3359_s1 = inlined_call_operand.vmem [shape: bf16[512,512], index: 1, kind: input, shape index: {}]   ;;  %s3360_s0 = inlined_call_operand.vmem [shape: f32[8,512], index: 0, kind: input, shape index: {}]   ;;  %s3361_s5 = inlined_call_operand.vmem [shape: f32[1,128], index: 5, kind: input, shape index: {}]   ;;  %s3362_s4 = inlined_call_operand.vmem [shape: bf16[512,128], index: 4, kind: input, shape index: {}]   ;;  %s3363_s2 = inlined_call_operand.vmem [shape: f32[1,512], index: 2, kind: input, shape index: {}]   ;;  %s3364_s3 = inlined_call_operand.vmem [shape: f32[1,512], index: 3, kind: input, shape index: {}]   ;;  %s3365_s6 = inlined_call_operand.vmem [shape: f32[8,128], index: 6, kind: output, shape index: {}]  }
   0x1   :  { %v1626_v0 = vld [vmem:[%s3359_s1 + $0xe0] sm:$0xf]  ;;  %v2183_v1 = vld [vmem:[%s3359_s1 + $0xec] sm:$0xf0] }
   0x2   :  { %v1754_v2 = vld [vmem:[%s3359_s1 + $0x1e0] sm:$0xf]  ;;  %v1627_v3 = vor.u32 %v2183_v1, %v1626_v0  ;;  %v2215_v4 = vld [vmem:[%s3359_s1 + $0x1ec] sm:$0xf0] }
   0x3   :  { %v1882_v5 = vld [vmem:[%s3359_s1 + $0x2e0] sm:$0xf]  ;;  %v2247_v6 = vld [vmem:[%s3359_s1 + $0x2ec] sm:$0xf0]  ;;  %v1755_v7 = vor.u32 %v2215_v4, %v1754_v2 }
   0x4   :  { %v1883_v8 = vor.u32 %v2247_v6, %v1882_v5  ;;  %v2010_v9 = vld [vmem:[%s3359_s1 + $0x3e0] sm:$0xf]  ;;  %v2279_v10 = vld [vmem:[%s3359_s1 + $0x3ec] sm:$0xf0]  ;;  %799 = vmatpush.bf16.msra.mxu0 %v1627_v3 }
   0x5   :  { %v1610_v11 = vld [vmem:[%s3359_s1 + $0xc0] sm:$0xf]  ;;  %v2011_v12 = vor.u32 %v2279_v10, %v2010_v9  ;;  %v2179_v13 = vld [vmem:[%s3359_s1 + $0xcc] sm:$0xf0]  ;;  %812 = vmatpush.bf16.msra.mxu1 %v1755_v7 }
   0x6   :  { %v1738_v14 = vld [vmem:[%s3359_s1 + $0x1c0] sm:$0xf]  ;;  %v2211_v15 = vld [vmem:[%s3359_s1 + $0x1cc] sm:$0xf0]  ;;  %825 = vmatpush.bf16.msra.mxu2 %v1883_v8  ;;  %v1611_v16 = vor.u32 %v2179_v13, %v1610_v11 }
   0x7   :  { %v1739_v17 = vor.u32 %v2211_v15, %v1738_v14  ;;  %v1866_v18 = vld [vmem:[%s3359_s1 + $0x2c0] sm:$0xf]  ;;  %v2243_v19 = vld [vmem:[%s3359_s1 + $0x2cc] sm:$0xf0]  ;;  %838 = vmatpush.bf16.msra.mxu3 %v2011_v12 }
   0x8   :  { %v1994_v20 = vld [vmem:[%s3359_s1 + $0x3c0] sm:$0xf]  ;;  %v1867_v21 = vor.u32 %v2243_v19, %v1866_v18  ;;  %v2275_v22 = vld [vmem:[%s3359_s1 + $0x3cc] sm:$0xf0]  ;;  %800 = vmatpush.bf16.msra.mxu0 %v1611_v16 }
   0x9   :  { %v1594_v23 = vld [vmem:[%s3359_s1 + $0xa0] sm:$0xf]  ;;  %v2175_v24 = vld [vmem:[%s3359_s1 + $0xac] sm:$0xf0]  ;;  %v1995_v25 = vor.u32 %v2275_v22, %v1994_v20  ;;  %813 = vmatpush.bf16.msra.mxu1 %v1739_v17 }
   0xa   :  { %v1722_v26 = vld [vmem:[%s3359_s1 + $0x1a0] sm:$0xf]  ;;  %v2207_v27 = vld [vmem:[%s3359_s1 + $0x1ac] sm:$0xf0]  ;;  %v1595_v29 = vor.u32 %v2175_v24, %v1594_v23  ;;  %826 = vmatpush.bf16.msra.mxu2 %v1867_v21 }
   0xb   :  { %v1850_v28 = vld [vmem:[%s3359_s1 + $0x2a0] sm:$0xf]  ;;  %v2239_v30 = vld [vmem:[%s3359_s1 + $0x2ac] sm:$0xf0]  ;;  %v1723_v33 = vor.u32 %v2207_v27, %v1722_v26  ;;  %839 = vmatpush.bf16.msra.mxu3 %v1995_v25 }
   0xc   :  { %v1978_v31 = vld [vmem:[%s3359_s1 + $0x3a0] sm:$0xf]  ;;  %v2271_v32 = vld [vmem:[%s3359_s1 + $0x3ac] sm:$0xf0]  ;;  %v1851_v34 = vor.u32 %v2239_v30, %v1850_v28  ;;  %801 = vmatpush.bf16.msra.mxu0 %v1595_v29  ;;  %v2181_v28 = vld [vmem:[%s3359_s1 + $0xe4] sm:$0xf] }
   0xd   :  { %v1578_v35 = vld [vmem:[%s3359_s1 + $0x80] sm:$0xf]  ;;  %v2171_v36 = vld [vmem:[%s3359_s1 + $0x8c] sm:$0xf0]  ;;  %v1979_v38 = vor.u32 %v2271_v32, %v1978_v31  ;;  %814 = vmatpush.bf16.msra.mxu1 %v1723_v33  ;;  %v1628_v29 = vld [vmem:[%s3359_s1 + $0xf0] sm:$0xf0] }
   0xe   :  { %v1706_v37 = vld [vmem:[%s3359_s1 + $0x180] sm:$0xf]  ;;  %v2203_v39 = vld [vmem:[%s3359_s1 + $0x18c] sm:$0xf0]  ;;  %v1579_v44 = vor.u32 %v2171_v36, %v1578_v35  ;;  %827 = vmatpush.bf16.msra.mxu2 %v1851_v34  ;;  %v2213_v30 = vld [vmem:[%s3359_s1 + $0x1e4] sm:$0xf] }
   0xf   :  { %v1834_v40 = vld [vmem:[%s3359_s1 + $0x280] sm:$0xf]  ;;  %v2235_v41 = vld [vmem:[%s3359_s1 + $0x28c] sm:$0xf0]  ;;  %v1707_v45 = vor.u32 %v2203_v39, %v1706_v37  ;;  %840 = vmatpush.bf16.msra.mxu3 %v1979_v38  ;;  %v1756_v32 = vld [vmem:[%s3359_s1 + $0x1f0] sm:$0xf0] }
  0x10   :  { %v1962_v42 = vld [vmem:[%s3359_s1 + $0x380] sm:$0xf]  ;;  %v2267_v43 = vld [vmem:[%s3359_s1 + $0x38c] sm:$0xf0]  ;;  %v1835_v46 = vor.u32 %v2235_v41, %v1834_v40  ;;  %802 = vmatpush.bf16.msra.mxu0 %v1579_v44  ;;  %v2245_v33 = vld [vmem:[%s3359_s1 + $0x2e4] sm:$0xf]  ;;  %v1631_v41 = vor.u32 %v2181_v28, %v1628_v29 }
  0x11   :  { %v1562_v47 = vld [vmem:[%s3359_s1 + $0x60] sm:$0xf]  ;;  %v2167_v48 = vld [vmem:[%s3359_s1 + $0x6c] sm:$0xf0]  ;;  %v1963_v50 = vor.u32 %v2267_v43, %v1962_v42  ;;  %815 = vmatpush.bf16.msra.mxu1 %v1707_v45  ;;  %v1884_v34 = vld [vmem:[%s3359_s1 + $0x2f0] sm:$0xf0]  ;;  %v1759_v45 = vor.u32 %v2213_v30, %v1756_v32 }
  0x12   :  { %v1690_v49 = vld [vmem:[%s3359_s1 + $0x160] sm:$0xf]  ;;  %v2199_v51 = vld [vmem:[%s3359_s1 + $0x16c] sm:$0xf0]  ;;  %v1563_v56 = vor.u32 %v2167_v48, %v1562_v47  ;;  %828 = vmatpush.bf16.msra.mxu2 %v1835_v46  ;;  %v2277_v37 = vld [vmem:[%s3359_s1 + $0x3e4] sm:$0xf]  ;;  %v1887_v46 = vor.u32 %v2245_v33, %v1884_v34 }
  0x13   :  { %v1818_v52 = vld [vmem:[%s3359_s1 + $0x260] sm:$0xf]  ;;  %v2231_v53 = vld [vmem:[%s3359_s1 + $0x26c] sm:$0xf0]  ;;  %v1691_v57 = vor.u32 %v2199_v51, %v1690_v49  ;;  %841 = vmatpush.bf16.msra.mxu3 %v1963_v50  ;;  %v2012_v38 = vld [vmem:[%s3359_s1 + $0x3f0] sm:$0xf0] }
  0x14   :  { %v1946_v54 = vld [vmem:[%s3359_s1 + $0x360] sm:$0xf]  ;;  %v2263_v55 = vld [vmem:[%s3359_s1 + $0x36c] sm:$0xf0]  ;;  %v1819_v58 = vor.u32 %v2231_v53, %v1818_v52  ;;  %803 = vmatpush.bf16.msra.mxu0 %v1563_v56  ;;  %v26_v42 = vld [vmem:[%s3360_s0 + $0x18] sm:$0xff]  ;;  %v2015_v50 = vor.u32 %v2277_v37, %v2012_v38 }
  0x15   :  { %v1546_v59 = vld [vmem:[%s3359_s1 + $0x40] sm:$0xf]  ;;  %v2163_v60 = vld [vmem:[%s3359_s1 + $0x4c] sm:$0xf0]  ;;  %v1947_v62 = vor.u32 %v2263_v55, %v1946_v54  ;;  %816 = vmatpush.bf16.msra.mxu1 %v1691_v57  ;;  %v2177_v43 = vld [vmem:[%s3359_s1 + $0xc4] sm:$0xf]  ;;  %v2607_v55 = vpack.c.bf16 %v26_v42, %v26_v42 }
  0x16   :  { %v1674_v61 = vld [vmem:[%s3359_s1 + $0x140] sm:$0xf]  ;;  %v2195_v63 = vld [vmem:[%s3359_s1 + $0x14c] sm:$0xf0]  ;;  %v1547_v4 = vor.u32 %v2163_v60, %v1546_v59  ;;  %829 = vmatpush.bf16.msra.mxu2 %v1819_v58  ;;  %v1612_v47 = vld [vmem:[%s3359_s1 + $0xd0] sm:$0xf0] }
  0x17   :  { %v1802_v0 = vld [vmem:[%s3359_s1 + $0x240] sm:$0xf]  ;;  %v2227_v1 = vld [vmem:[%s3359_s1 + $0x24c] sm:$0xf0]  ;;  %v1675_v5 = vor.u32 %v2195_v63, %v1674_v61  ;;  %842 = vmatpush.bf16.msra.mxu3 %v1947_v62  ;;  %v2209_v48 = vld [vmem:[%s3359_s1 + $0x1c4] sm:$0xf]  ;;  %v1615_v59 = vor.u32 %v2177_v43, %v1612_v47 }
  0x18   :  { %v1930_v2 = vld [vmem:[%s3359_s1 + $0x340] sm:$0xf]  ;;  %v2259_v3 = vld [vmem:[%s3359_s1 + $0x34c] sm:$0xf0]  ;;  %v1803_v6 = vor.u32 %v2227_v1, %v1802_v0  ;;  %804 = vmatpush.bf16.msra.mxu0 %v1547_v4  ;;  %v24_v49 = vld [vmem:[%s3360_s0 + $0x8] sm:$0xff] }
  0x19   :  { %v1530_v7 = vld [vmem:[%s3359_s1 + $0x20] sm:$0xf]  ;;  %v2159_v8 = vld [vmem:[%s3359_s1 + $0x2c] sm:$0xf0]  ;;  %v1931_v10 = vor.u32 %v2259_v3, %v1930_v2  ;;  %817 = vmatpush.bf16.msra.mxu1 %v1675_v5  ;;  %v1740_v52 = vld [vmem:[%s3359_s1 + $0x1d0] sm:$0xf0]  ;;  %v2617_v60 = vpack.c.bf16 %v24_v49, %v24_v49 }
  0x1a   :  { %v1658_v9 = vld [vmem:[%s3359_s1 + $0x120] sm:$0xf]  ;;  %v2191_v11 = vld [vmem:[%s3359_s1 + $0x12c] sm:$0xf0]  ;;  %v1531_v16 = vor.u32 %v2159_v8, %v1530_v7  ;;  %830 = vmatpush.bf16.msra.mxu2 %v1803_v6  ;;  %v2241_v53 = vld [vmem:[%s3359_s1 + $0x2c4] sm:$0xf]  ;;  %v1743_v61 = vor.u32 %v2209_v48, %v1740_v52 }
  0x1b   :  { %v1786_v12 = vld [vmem:[%s3359_s1 + $0x220] sm:$0xf]  ;;  %v2223_v13 = vld [vmem:[%s3359_s1 + $0x22c] sm:$0xf0]  ;;  %v1659_v19 = vor.u32 %v2191_v11, %v1658_v9  ;;  %843 = vmatpush.bf16.msra.mxu3 %v1931_v10  ;;  %v1868_v54 = vld [vmem:[%s3359_s1 + $0x2d0] sm:$0xf0] }
  0x1c   :  { %v1914_v14 = vld [vmem:[%s3359_s1 + $0x320] sm:$0xf]  ;;  %v2255_v15 = vld [vmem:[%s3359_s1 + $0x32c] sm:$0xf0]  ;;  %v1787_v20 = vor.u32 %v2223_v13, %v1786_v12  ;;  %805 = vmatpush.bf16.msra.mxu0 %v1531_v16  ;;  %v2273_v56 = vld [vmem:[%s3359_s1 + $0x3c4] sm:$0xf]  ;;  %v1871_v62 = vor.u32 %v2241_v53, %v1868_v54 }
  0x1d   :  { %v1514_v17 = vld [vmem:[%s3359_s1] sm:$0xf]  ;;  %v2155_v18 = vld [vmem:[%s3359_s1 + $0xc] sm:$0xf0]  ;;  %v1915_v24 = vor.u32 %v2255_v15, %v1914_v14  ;;  %818 = vmatpush.bf16.msra.mxu1 %v1659_v19  ;;  %v1996_v57 = vld [vmem:[%s3359_s1 + $0x3d0] sm:$0xf0] }
  0x1e   :  { %v1642_v21 = vld [vmem:[%s3359_s1 + $0x100] sm:$0xf]  ;;  %v2187_v22 = vld [vmem:[%s3359_s1 + $0x10c] sm:$0xf0]  ;;  %v1515_v31 = vor.u32 %v2155_v18, %v1514_v17  ;;  %831 = vmatpush.bf16.msra.mxu2 %v1787_v20  ;;  %v2173_v63 = vld [vmem:[%s3359_s1 + $0xa4] sm:$0xf]  ;;  %v1999_v2 = vor.u32 %v2273_v56, %v1996_v57 }
  0x1f   :  { %v1770_v23 = vld [vmem:[%s3359_s1 + $0x200] sm:$0xf]  ;;  %v2219_v25 = vld [vmem:[%s3359_s1 + $0x20c] sm:$0xf0]  ;;  %v1643_v35 = vor.u32 %v2187_v22, %v1642_v21  ;;  %844 = vmatpush.bf16.msra.mxu3 %v1915_v24  ;;  %v1596_v0 = vld [vmem:[%s3359_s1 + $0xb0] sm:$0xf0] }
  0x20   :  { %v1898_v26 = vld [vmem:[%s3359_s1 + $0x300] sm:$0xf]  ;;  %v2251_v27 = vld [vmem:[%s3359_s1 + $0x30c] sm:$0xf0]  ;;  %v1771_v36 = vor.u32 %v2219_v25, %v1770_v23  ;;  %806 = vmatpush.bf16.msra.mxu0 %v1515_v31  ;;  %v2205_v1 = vld [vmem:[%s3359_s1 + $0x1a4] sm:$0xf]  ;;  %v1599_v8 = vor.u32 %v2173_v63, %v1596_v0 }
  0x21   :  { %v25_v39 = vld [vmem:[%s3360_s0 + $0x10] sm:$0xff]  ;;  %v1899_v40 = vor.u32 %v2251_v27, %v1898_v26  ;;  %v23_v44 = vld [vmem:[%s3360_s0] sm:$0xff]  ;;  %819 = vmatpush.bf16.msra.mxu1 %v1643_v35 }
  0x22   :  { %v2596_v51 = vpack.c.bf16 %v25_v39, %v25_v39  ;;  %832 = vmatpush.bf16.msra.mxu2 %v1771_v36  ;;  %v2615_v58 = vpack.c.bf16 %v23_v44, %v23_v44  ;;  %v1724_v3 = vld [vmem:[%s3359_s1 + $0x1b0] sm:$0xf0]  ;;  %v2237_v4 = vld [vmem:[%s3359_s1 + $0x2a4] sm:$0xf] }
  0x23   :  { %845 = vmatpush.bf16.msra.mxu3 %v1899_v40  ;;  %v1852_v5 = vld [vmem:[%s3359_s1 + $0x2b0] sm:$0xf0]  ;;  %v2269_v6 = vld [vmem:[%s3359_s1 + $0x3a4] sm:$0xf]  ;;  %v1727_v9 = vor.u32 %v2205_v1, %v1724_v3 }
  0x24   :  { %851 = vmatpush.bf16.msrb.mxu0 %v1631_v41  ;;  %v1980_v7 = vld [vmem:[%s3359_s1 + $0x3b0] sm:$0xf0]  ;;  %820 = vmatmul.bf16.vlgmr.msra.gmra.mxu1 %v2617_v60  ;;  %v1855_v10 = vor.u32 %v2237_v4, %v1852_v5  ;;  %v2169_v11 = vld [vmem:[%s3359_s1 + $0x84] sm:$0xf] }
  0x25   :  { %864 = vmatpush.bf16.msrb.mxu1 %v1759_v45  ;;  %833 = vmatmul.bf16.vlgmr.msra.gmra.mxu2 %v2596_v51  ;;  %v1580_v12 = vld [vmem:[%s3359_s1 + $0x90] sm:$0xf0]  ;;  %v2201_v13 = vld [vmem:[%s3359_s1 + $0x184] sm:$0xf]  ;;  %v1983_v14 = vor.u32 %v2269_v6, %v1980_v7 }
  0x26   :  { %877 = vmatpush.bf16.msrb.mxu2 %v1887_v46  ;;  %846 = vmatmul.bf16.vlgmr.msra.gmra.mxu3 %v2607_v55  ;;  %v1708_v15 = vld [vmem:[%s3359_s1 + $0x190] sm:$0xf0]  ;;  %v2233_v16 = vld [vmem:[%s3359_s1 + $0x284] sm:$0xf]  ;;  %v1583_v20 = vor.u32 %v2169_v11, %v1580_v12  ;;  %v2216_v12 = vld [vmem:[%s3359_s1 + $0x1f4] sm:$0xf0] }
  0x27   :  { %890 = vmatpush.bf16.msrb.mxu3 %v2015_v50  ;;  %807 = vmatmul.bf16.vlgmr.msra.gmra.mxu0 %v2615_v58  ;;  %v1836_v17 = vld [vmem:[%s3359_s1 + $0x290] sm:$0xf0]  ;;  %v2265_v18 = vld [vmem:[%s3359_s1 + $0x384] sm:$0xf]  ;;  %v1711_v21 = vor.u32 %v2201_v13, %v1708_v15  ;;  %v1890_v13 = vld [vmem:[%s3359_s1 + $0x2e8] sm:$0xf] }
  0x28   :  { %852 = vmatpush.bf16.msrb.mxu0 %v1615_v59  ;;  %v1964_v19 = vld [vmem:[%s3359_s1 + $0x390] sm:$0xf0]  ;;  %v1839_v22 = vor.u32 %v2233_v16, %v1836_v17  ;;  %v2165_v23 = vld [vmem:[%s3359_s1 + $0x64] sm:$0xf]  ;;  %v2018_v17 = vld [vmem:[%s3359_s1 + $0x3e8] sm:$0xf] }
  0x29   :  { %865 = vmatpush.bf16.msrb.mxu1 %v1743_v61  ;;  %v1564_v24 = vld [vmem:[%s3359_s1 + $0x70] sm:$0xf0]  ;;  %v2197_v25 = vld [vmem:[%s3359_s1 + $0x164] sm:$0xf]  ;;  %v1967_v26 = vor.u32 %v2265_v18, %v1964_v19  ;;  %v2280_v18 = vld [vmem:[%s3359_s1 + $0x3f4] sm:$0xf0] }
  0x2a   :  { %878 = vmatpush.bf16.msrb.mxu2 %v1871_v62  ;;  %v1692_v27 = vld [vmem:[%s3359_s1 + $0x170] sm:$0xf0]  ;;  %v2229_v28 = vld [vmem:[%s3359_s1 + $0x264] sm:$0xf]  ;;  %v1567_v32 = vor.u32 %v2165_v23, %v1564_v24  ;;  %v1618_v23 = vld [vmem:[%s3359_s1 + $0xc8] sm:$0xf] }
  0x2b   :  { %891 = vmatpush.bf16.msrb.mxu3 %v1999_v2  ;;  %v1820_v29 = vld [vmem:[%s3359_s1 + $0x270] sm:$0xf0]  ;;  %v2261_v30 = vld [vmem:[%s3359_s1 + $0x364] sm:$0xf]  ;;  %v1695_v33 = vor.u32 %v2197_v25, %v1692_v27  ;;  %v2180_v24 = vld [vmem:[%s3359_s1 + $0xd4] sm:$0xf0] }
  0x2c   :  { %853 = vmatpush.bf16.msrb.mxu0 %v1599_v8  ;;  %v1948_v31 = vld [vmem:[%s3359_s1 + $0x370] sm:$0xf0]  ;;  %v1823_v34 = vor.u32 %v2229_v28, %v1820_v29  ;;  %v2161_v35 = vld [vmem:[%s3359_s1 + $0x44] sm:$0xf]  ;;  %v1634_v8 = vld [vmem:[%s3359_s1 + $0xe8] sm:$0xf] }
  0x2d   :  { %866 = vmatpush.bf16.msrb.mxu1 %v1727_v9  ;;  %v1548_v36 = vld [vmem:[%s3359_s1 + $0x50] sm:$0xf0]  ;;  %v2193_v37 = vld [vmem:[%s3359_s1 + $0x144] sm:$0xf]  ;;  %v1951_v38 = vor.u32 %v2261_v30, %v1948_v31  ;;  %v2184_v9 = vld [vmem:[%s3359_s1 + $0xf4] sm:$0xf0] }
  0x2e   :  { %879 = vmatpush.bf16.msrb.mxu2 %v1855_v10  ;;  %v1676_v39 = vld [vmem:[%s3359_s1 + $0x150] sm:$0xf0]  ;;  %v2225_v40 = vld [vmem:[%s3359_s1 + $0x244] sm:$0xf]  ;;  %v1551_v44 = vor.u32 %v2161_v35, %v1548_v36  ;;  %v1762_v10 = vld [vmem:[%s3359_s1 + $0x1e8] sm:$0xf] }
  0x2f   :  { %892 = vmatpush.bf16.msrb.mxu3 %v1983_v14  ;;  %v1804_v41 = vld [vmem:[%s3359_s1 + $0x250] sm:$0xf0]  ;;  %v2257_v42 = vld [vmem:[%s3359_s1 + $0x344] sm:$0xf]  ;;  %v1679_v45 = vor.u32 %v2193_v37, %v1676_v39  ;;  %v2248_v14 = vld [vmem:[%s3359_s1 + $0x2f4] sm:$0xf0] }
  0x30   :  { %854 = vmatpush.bf16.msrb.mxu0 %v1583_v20  ;;  %v1932_v43 = vld [vmem:[%s3359_s1 + $0x350] sm:$0xf0]  ;;  %v1807_v46 = vor.u32 %v2225_v40, %v1804_v41  ;;  %v2157_v47 = vld [vmem:[%s3359_s1 + $0x24] sm:$0xf]  ;;  %v1635_v20 = vor.u32 %v2184_v9, %v1634_v8  ;;  %v1746_v25 = vld [vmem:[%s3359_s1 + $0x1c8] sm:$0xf] }
  0x31   :  { %867 = vmatpush.bf16.msrb.mxu1 %v1711_v21  ;;  %v1532_v48 = vld [vmem:[%s3359_s1 + $0x30] sm:$0xf0]  ;;  %v2189_v49 = vld [vmem:[%s3359_s1 + $0x124] sm:$0xf]  ;;  %v1935_v50 = vor.u32 %v2257_v42, %v1932_v43  ;;  %v1763_v21 = vor.u32 %v2216_v12, %v1762_v10  ;;  %v2212_v27 = vld [vmem:[%s3359_s1 + $0x1d4] sm:$0xf0] }
  0x32   :  { %880 = vmatpush.bf16.msrb.mxu2 %v1839_v22  ;;  %v1660_v52 = vld [vmem:[%s3359_s1 + $0x130] sm:$0xf0]  ;;  %v2221_v53 = vld [vmem:[%s3359_s1 + $0x224] sm:$0xf]  ;;  %v1535_v59 = vor.u32 %v2157_v47, %v1532_v48  ;;  %v1891_v22 = vor.u32 %v2248_v14, %v1890_v13  ;;  %v1874_v28 = vld [vmem:[%s3359_s1 + $0x2c8] sm:$0xf] }
  0x33   :  { %893 = vmatpush.bf16.msrb.mxu3 %v1967_v26  ;;  %v1788_v54 = vld [vmem:[%s3359_s1 + $0x230] sm:$0xf0]  ;;  %v2253_v56 = vld [vmem:[%s3359_s1 + $0x324] sm:$0xf]  ;;  %v1663_v63 = vor.u32 %v2189_v49, %v1660_v52  ;;  %v2019_v26 = vor.u32 %v2280_v18, %v2018_v17  ;;  %v2244_v29 = vld [vmem:[%s3359_s1 + $0x2d4] sm:$0xf0] }
  0x34   :  { %855 = vmatpush.bf16.msrb.mxu0 %v1567_v32  ;;  %v1916_v57 = vld [vmem:[%s3359_s1 + $0x330] sm:$0xf0]  ;;  %v2153_v61 = vld [vmem:[%s3359_s1 + $0x4] sm:$0xf]  ;;  %v1791_v0 = vor.u32 %v2221_v53, %v1788_v54  ;;  %v2002_v30 = vld [vmem:[%s3359_s1 + $0x3c8] sm:$0xf]  ;;  %v1619_v32 = vor.u32 %v2180_v24, %v1618_v23 }
  0x35   :  { %868 = vmatpush.bf16.msrb.mxu1 %v1695_v33  ;;  %v1516_v62 = vld [vmem:[%s3359_s1 + $0x10] sm:$0xf0]  ;;  %v2185_v1 = vld [vmem:[%s3359_s1 + $0x104] sm:$0xf]  ;;  %v1919_v4 = vor.u32 %v2253_v56, %v1916_v57  ;;  %v2276_v31 = vld [vmem:[%s3359_s1 + $0x3d4] sm:$0xf0]  ;;  %v1747_v33 = vor.u32 %v2212_v27, %v1746_v25 }
  0x36   :  { %881 = vmatpush.bf16.msrb.mxu2 %v1823_v34  ;;  %v1644_v2 = vld [vmem:[%s3359_s1 + $0x110] sm:$0xf0]  ;;  %v2217_v3 = vld [vmem:[%s3359_s1 + $0x204] sm:$0xf]  ;;  %v1519_v11 = vor.u32 %v2153_v61, %v1516_v62  ;;  %v1875_v34 = vor.u32 %v2244_v29, %v1874_v28  ;;  %v1602_v35 = vld [vmem:[%s3359_s1 + $0xa8] sm:$0xf] }
  0x37   :  { %894 = vmatpush.bf16.msrb.mxu3 %v1951_v38  ;;  %v1772_v5 = vld [vmem:[%s3359_s1 + $0x210] sm:$0xf0]  ;;  %v2249_v6 = vld [vmem:[%s3359_s1 + $0x304] sm:$0xf]  ;;  %v1647_v15 = vor.u32 %v2185_v1, %v1644_v2  ;;  %v2176_v36 = vld [vmem:[%s3359_s1 + $0xb4] sm:$0xf0]  ;;  %v2003_v38 = vor.u32 %v2276_v31, %v2002_v30 }
  0x38   :  { %856 = vmatpush.bf16.msrb.mxu0 %v1551_v44  ;;  %v1900_v7 = vld [vmem:[%s3359_s1 + $0x310] sm:$0xf0]  ;;  %v1775_v16 = vor.u32 %v2217_v3, %v1772_v5  ;;  %v1730_v37 = vld [vmem:[%s3359_s1 + $0x1a8] sm:$0xf]  ;;  %v2208_v39 = vld [vmem:[%s3359_s1 + $0x1b4] sm:$0xf0]  ;;  %v1603_v44 = vor.u32 %v2176_v36, %v1602_v35 }
  0x39   :  { %869 = vmatpush.bf16.msrb.mxu1 %v1679_v45  ;;  %v1903_v19 = vor.u32 %v2249_v6, %v1900_v7  ;;  %v1858_v40 = vld [vmem:[%s3359_s1 + $0x2a8] sm:$0xf]  ;;  %v2240_v41 = vld [vmem:[%s3359_s1 + $0x2b4] sm:$0xf0]  ;;  %v1731_v45 = vor.u32 %v2208_v39, %v1730_v37 }
  0x3a   :  { %882 = vmatpush.bf16.msrb.mxu2 %v1807_v46  ;;  %v1986_v42 = vld [vmem:[%s3359_s1 + $0x3a8] sm:$0xf]  ;;  %v2272_v43 = vld [vmem:[%s3359_s1 + $0x3b4] sm:$0xf0]  ;;  %v1859_v46 = vor.u32 %v2240_v41, %v1858_v40 }
  0x3b   :  { %895 = vmatpush.bf16.msrb.mxu3 %v1935_v50  ;;  %v1586_v47 = vld [vmem:[%s3359_s1 + $0x88] sm:$0xf]  ;;  %v2172_v48 = vld [vmem:[%s3359_s1 + $0x94] sm:$0xf0]  ;;  %v1987_v50 = vor.u32 %v2272_v43, %v1986_v42 }
  0x3c   :  { %857 = vmatpush.bf16.msrb.mxu0 %v1535_v59  ;;  %v1714_v49 = vld [vmem:[%s3359_s1 + $0x188] sm:$0xf]  ;;  %v2204_v52 = vld [vmem:[%s3359_s1 + $0x194] sm:$0xf0]  ;;  %v1587_v59 = vor.u32 %v2172_v48, %v1586_v47  ;;  %v1764_v48 = vld [vmem:[%s3359_s1 + $0x1f8] sm:$0xf0] }
  0x3d   :  { %870 = vmatpush.bf16.msrb.mxu1 %v1663_v63  ;;  %v1842_v53 = vld [vmem:[%s3359_s1 + $0x288] sm:$0xf]  ;;  %v2236_v54 = vld [vmem:[%s3359_s1 + $0x294] sm:$0xf0]  ;;  %v1715_v61 = vor.u32 %v2204_v52, %v1714_v49  ;;  %v2246_v49 = vld [vmem:[%s3359_s1 + $0x2ec] sm:$0xf] }
  0x3e   :  { %883 = vmatpush.bf16.msrb.mxu2 %v1791_v0  ;;  %v1970_v56 = vld [vmem:[%s3359_s1 + $0x388] sm:$0xf]  ;;  %v2268_v57 = vld [vmem:[%s3359_s1 + $0x394] sm:$0xf0]  ;;  %v1843_v62 = vor.u32 %v2236_v54, %v1842_v53  ;;  %v2278_v54 = vld [vmem:[%s3359_s1 + $0x3ec] sm:$0xf] }
  0x3f   :  { %896 = vmatpush.bf16.msrb.mxu3 %v1919_v4  ;;  %v1570_v63 = vld [vmem:[%s3359_s1 + $0x68] sm:$0xf]  ;;  %v2168_v0 = vld [vmem:[%s3359_s1 + $0x74] sm:$0xf0]  ;;  %v1971_v2 = vor.u32 %v2268_v57, %v1970_v56  ;;  %v2020_v56 = vld [vmem:[%s3359_s1 + $0x3f8] sm:$0xf0] }
  0x40   :  { %858 = vmatpush.bf16.msrb.mxu0 %v1519_v11  ;;  %v1698_v1 = vld [vmem:[%s3359_s1 + $0x168] sm:$0xf]  ;;  %v2200_v3 = vld [vmem:[%s3359_s1 + $0x174] sm:$0xf0]  ;;  %v1571_v8 = vor.u32 %v2168_v0, %v1570_v63  ;;  %v2178_v63 = vld [vmem:[%s3359_s1 + $0xcc] sm:$0xf] }
  0x41   :  { %871 = vmatpush.bf16.msrb.mxu1 %v1647_v15  ;;  %v1826_v4 = vld [vmem:[%s3359_s1 + $0x268] sm:$0xf]  ;;  %v2232_v5 = vld [vmem:[%s3359_s1 + $0x274] sm:$0xf0]  ;;  %v1699_v9 = vor.u32 %v2200_v3, %v1698_v1  ;;  %v1620_v0 = vld [vmem:[%s3359_s1 + $0xd8] sm:$0xf0] }
  0x42   :  { %884 = vmatpush.bf16.msrb.mxu2 %v1775_v16  ;;  %v1954_v6 = vld [vmem:[%s3359_s1 + $0x368] sm:$0xf]  ;;  %v2264_v7 = vld [vmem:[%s3359_s1 + $0x374] sm:$0xf0]  ;;  %v1827_v10 = vor.u32 %v2232_v5, %v1826_v4  ;;  %v2210_v1 = vld [vmem:[%s3359_s1 + $0x1cc] sm:$0xf] }
  0x43   :  { %897 = vmatpush.bf16.msrb.mxu3 %v1903_v19  ;;  %859 = vmatmul.bf16.vlgmr.msrb.gmra.mxu0 %v2615_v58  ;;  %v1554_v11 = vld [vmem:[%s3359_s1 + $0x48] sm:$0xf]  ;;  %v2164_v12 = vld [vmem:[%s3359_s1 + $0x54] sm:$0xf0]  ;;  %v1955_v14 = vor.u32 %v2264_v7, %v1954_v6  ;;  %v1748_v3 = vld [vmem:[%s3359_s1 + $0x1d8] sm:$0xf0] }
  0x44   :  { %903 = vmatpush.bf16.msra.mxu0 %v1635_v20  ;;  %872 = vmatmul.bf16.vlgmr.msrb.gmra.mxu1 %v2617_v60  ;;  %v1682_v13 = vld [vmem:[%s3359_s1 + $0x148] sm:$0xf]  ;;  %v2196_v15 = vld [vmem:[%s3359_s1 + $0x154] sm:$0xf0]  ;;  %v1555_v20 = vor.u32 %v2164_v12, %v1554_v11  ;;  %v2242_v4 = vld [vmem:[%s3359_s1 + $0x2cc] sm:$0xf] }
  0x45   :  { %916 = vmatpush.bf16.msra.mxu1 %v1763_v21  ;;  %885 = vmatmul.bf16.vlgmr.msrb.gmra.mxu2 %v2596_v51  ;;  %v1810_v16 = vld [vmem:[%s3359_s1 + $0x248] sm:$0xf]  ;;  %v2228_v17 = vld [vmem:[%s3359_s1 + $0x254] sm:$0xf0]  ;;  %v1683_v21 = vor.u32 %v2196_v15, %v1682_v13  ;;  %v1876_v5 = vld [vmem:[%s3359_s1 + $0x2d8] sm:$0xf0] }
  0x46   :  { %929 = vmatpush.bf16.msra.mxu2 %v1891_v22  ;;  %898 = vmatmul.bf16.vlgmr.msrb.gmra.mxu3 %v2607_v55  ;;  %v1938_v18 = vld [vmem:[%s3359_s1 + $0x348] sm:$0xf]  ;;  %v2260_v19 = vld [vmem:[%s3359_s1 + $0x354] sm:$0xf0]  ;;  %v1811_v22 = vor.u32 %v2228_v17, %v1810_v16  ;;  %v2274_v6 = vld [vmem:[%s3359_s1 + $0x3cc] sm:$0xf] }
  0x47   :  { %942 = vmatpush.bf16.msra.mxu3 %v2019_v26  ;;  %v1538_v23 = vld [vmem:[%s3359_s1 + $0x28] sm:$0xf]  ;;  %v2160_v24 = vld [vmem:[%s3359_s1 + $0x34] sm:$0xf0]  ;;  %v1939_v26 = vor.u32 %v2260_v19, %v1938_v18  ;;  %v2004_v7 = vld [vmem:[%s3359_s1 + $0x3d8] sm:$0xf0] }
  0x48   :  { %904 = vmatpush.bf16.msra.mxu0 %v1619_v32  ;;  %v1666_v25 = vld [vmem:[%s3359_s1 + $0x128] sm:$0xf]  ;;  %v2192_v27 = vld [vmem:[%s3359_s1 + $0x134] sm:$0xf0]  ;;  %v1539_v32 = vor.u32 %v2160_v24, %v1538_v23  ;;  %v2174_v11 = vld [vmem:[%s3359_s1 + $0xac] sm:$0xf] }
  0x49   :  { %917 = vmatpush.bf16.msra.mxu1 %v1747_v33  ;;  %v1794_v28 = vld [vmem:[%s3359_s1 + $0x228] sm:$0xf]  ;;  %v2224_v29 = vld [vmem:[%s3359_s1 + $0x234] sm:$0xf0]  ;;  %v1667_v35 = vor.u32 %v2192_v27, %v1666_v25  ;;  %v1604_v12 = vld [vmem:[%s3359_s1 + $0xb8] sm:$0xf0] }
  0x4a   :  { %930 = vmatpush.bf16.msra.mxu2 %v1875_v34  ;;  %v1922_v30 = vld [vmem:[%s3359_s1 + $0x328] sm:$0xf]  ;;  %v2256_v31 = vld [vmem:[%s3359_s1 + $0x334] sm:$0xf0]  ;;  %v1795_v36 = vor.u32 %v2224_v29, %v1794_v28  ;;  %v2206_v13 = vld [vmem:[%s3359_s1 + $0x1ac] sm:$0xf] }
  0x4b   :  { %943 = vmatpush.bf16.msra.mxu3 %v2003_v38  ;;  %v1522_v33 = vld [vmem:[%s3359_s1 + $0x8] sm:$0xf]  ;;  %v2156_v34 = vld [vmem:[%s3359_s1 + $0x14] sm:$0xf0]  ;;  %v1923_v40 = vor.u32 %v2256_v31, %v1922_v30  ;;  %v1732_v15 = vld [vmem:[%s3359_s1 + $0x1b8] sm:$0xf0] }
  0x4c   :  { %905 = vmatpush.bf16.msra.mxu0 %v1603_v44  ;;  %v1650_v37 = vld [vmem:[%s3359_s1 + $0x108] sm:$0xf]  ;;  %v2188_v38 = vld [vmem:[%s3359_s1 + $0x114] sm:$0xf0]  ;;  %v2182_v44 = vld [vmem:[%s3359_s1 + $0xec] sm:$0xf]  ;;  %v1523_v47 = vor.u32 %v2156_v34, %v1522_v33 }
  0x4d   :  { %918 = vmatpush.bf16.msra.mxu1 %v1731_v45  ;;  %v1778_v39 = vld [vmem:[%s3359_s1 + $0x208] sm:$0xf]  ;;  %v2220_v41 = vld [vmem:[%s3359_s1 + $0x214] sm:$0xf0]  ;;  %v1636_v45 = vld [vmem:[%s3359_s1 + $0xf8] sm:$0xf0]  ;;  %v1651_v52 = vor.u32 %v2188_v38, %v1650_v37 }
  0x4e   :  { %931 = vmatpush.bf16.msra.mxu2 %v1859_v46  ;;  %v1906_v42 = vld [vmem:[%s3359_s1 + $0x308] sm:$0xf]  ;;  %v2252_v43 = vld [vmem:[%s3359_s1 + $0x314] sm:$0xf0]  ;;  %v2214_v46 = vld [vmem:[%s3359_s1 + $0x1ec] sm:$0xf]  ;;  %v1779_v53 = vor.u32 %v2220_v41, %v1778_v39 }
  0x4f   :  { %944 = vmatpush.bf16.msra.mxu3 %v1987_v50  ;;  %v1892_v50 = vld [vmem:[%s3359_s1 + $0x2f8] sm:$0xf0]  ;;  %v1907_v57 = vor.u32 %v2252_v43, %v1906_v42  ;;  %v2238_v16 = vld [vmem:[%s3359_s1 + $0x2ac] sm:$0xf] }
  0x50   :  { %906 = vmatpush.bf16.msra.mxu0 %v1587_v59  ;;  %v1639_v59 = vor.u32 %v2182_v44, %v1636_v45  ;;  %v1860_v17 = vld [vmem:[%s3359_s1 + $0x2b8] sm:$0xf0]  ;;  %v2270_v18 = vld [vmem:[%s3359_s1 + $0x3ac] sm:$0xf] }
  0x51   :  { %919 = vmatpush.bf16.msra.mxu1 %v1715_v61  ;;  %v1767_v61 = vor.u32 %v2214_v46, %v1764_v48  ;;  %v1988_v19 = vld [vmem:[%s3359_s1 + $0x3b8] sm:$0xf0]  ;;  %v2170_v23 = vld [vmem:[%s3359_s1 + $0x8c] sm:$0xf] }
  0x52   :  { %932 = vmatpush.bf16.msra.mxu2 %v1843_v62  ;;  %v1895_v62 = vor.u32 %v2246_v49, %v1892_v50  ;;  %v1588_v24 = vld [vmem:[%s3359_s1 + $0x98] sm:$0xf0]  ;;  %v2202_v25 = vld [vmem:[%s3359_s1 + $0x18c] sm:$0xf] }
  0x53   :  { %945 = vmatpush.bf16.msra.mxu3 %v1971_v2  ;;  %v2023_v2 = vor.u32 %v2278_v54, %v2020_v56  ;;  %v1716_v27 = vld [vmem:[%s3359_s1 + $0x198] sm:$0xf0]  ;;  %v2234_v28 = vld [vmem:[%s3359_s1 + $0x28c] sm:$0xf] }
  0x54   :  { %907 = vmatpush.bf16.msra.mxu0 %v1571_v8  ;;  %v1623_v8 = vor.u32 %v2178_v63, %v1620_v0  ;;  %v1844_v29 = vld [vmem:[%s3359_s1 + $0x298] sm:$0xf0]  ;;  %v2266_v30 = vld [vmem:[%s3359_s1 + $0x38c] sm:$0xf]  ;;  %v1719_v33 = vor.u32 %v2202_v25, %v1716_v27 }
  0x55   :  { %920 = vmatpush.bf16.msra.mxu1 %v1699_v9  ;;  %v1751_v9 = vor.u32 %v2210_v1, %v1748_v3  ;;  %v1972_v31 = vld [vmem:[%s3359_s1 + $0x398] sm:$0xf0]  ;;  %v1847_v34 = vor.u32 %v2234_v28, %v1844_v29  ;;  %v2198_v37 = vld [vmem:[%s3359_s1 + $0x16c] sm:$0xf] }
  0x56   :  { %933 = vmatpush.bf16.msra.mxu2 %v1827_v10  ;;  %v1879_v10 = vor.u32 %v2242_v4, %v1876_v5  ;;  %v1975_v38 = vor.u32 %v2266_v30, %v1972_v31  ;;  %v1700_v39 = vld [vmem:[%s3359_s1 + $0x178] sm:$0xf0]  ;;  %v2262_v42 = vld [vmem:[%s3359_s1 + $0x36c] sm:$0xf] }
  0x57   :  { %946 = vmatpush.bf16.msra.mxu3 %v1955_v14  ;;  %v2007_v14 = vor.u32 %v2274_v6, %v2004_v7  ;;  %v1828_v41 = vld [vmem:[%s3359_s1 + $0x278] sm:$0xf0]  ;;  %v1703_v45 = vor.u32 %v2198_v37, %v1700_v39  ;;  %v2194_v49 = vld [vmem:[%s3359_s1 + $0x14c] sm:$0xf] }
  0x58   :  { %908 = vmatpush.bf16.msra.mxu0 %v1555_v20  ;;  %v1607_v20 = vor.u32 %v2174_v11, %v1604_v12  ;;  %v1956_v43 = vld [vmem:[%s3359_s1 + $0x378] sm:$0xf0]  ;;  %v2258_v56 = vld [vmem:[%s3359_s1 + $0x34c] sm:$0xf] }
  0x59   :  { %921 = vmatpush.bf16.msra.mxu1 %v1683_v21  ;;  %v1735_v21 = vor.u32 %v2206_v13, %v1732_v15  ;;  %v1556_v48 = vld [vmem:[%s3359_s1 + $0x58] sm:$0xf0]  ;;  %v1959_v50 = vor.u32 %v2262_v42, %v1956_v43  ;;  %v2158_v63 = vld [vmem:[%s3359_s1 + $0x2c] sm:$0xf] }
  0x5a   :  { %934 = vmatpush.bf16.msra.mxu2 %v1811_v22  ;;  %v1863_v22 = vor.u32 %v2238_v16, %v1860_v17  ;;  %v1812_v54 = vld [vmem:[%s3359_s1 + $0x258] sm:$0xf0]  ;;  %v2190_v1 = vld [vmem:[%s3359_s1 + $0x12c] sm:$0xf] }
  0x5b   :  { %947 = vmatpush.bf16.msra.mxu3 %v1939_v26  ;;  %v1991_v26 = vor.u32 %v2270_v18, %v1988_v19  ;;  %v1540_v0 = vld [vmem:[%s3359_s1 + $0x38] sm:$0xf0]  ;;  %v2222_v4 = vld [vmem:[%s3359_s1 + $0x22c] sm:$0xf] }
  0x5c   :  { %909 = vmatpush.bf16.msra.mxu0 %v1539_v32  ;;  %v1591_v32 = vor.u32 %v2170_v23, %v1588_v24  ;;  %v1668_v3 = vld [vmem:[%s3359_s1 + $0x138] sm:$0xf0]  ;;  %v2254_v6 = vld [vmem:[%s3359_s1 + $0x32c] sm:$0xf] }
  0x5d   :  { %922 = vmatpush.bf16.msra.mxu1 %v1667_v35  ;;  %v2166_v35 = vld [vmem:[%s3359_s1 + $0x6c] sm:$0xf]  ;;  %v1796_v5 = vld [vmem:[%s3359_s1 + $0x238] sm:$0xf0] }
  0x5e   :  { %935 = vmatpush.bf16.msra.mxu2 %v1795_v36  ;;  %v1572_v36 = vld [vmem:[%s3359_s1 + $0x78] sm:$0xf0]  ;;  %v2154_v11 = vld [vmem:[%s3359_s1 + $0xc] sm:$0xf] }
  0x5f   :  { %948 = vmatpush.bf16.msra.mxu3 %v1923_v40  ;;  %v2230_v40 = vld [vmem:[%s3359_s1 + $0x26c] sm:$0xf]  ;;  %v1575_v44 = vor.u32 %v2166_v35, %v1572_v36  ;;  %v1924_v7 = vld [vmem:[%s3359_s1 + $0x338] sm:$0xf0]  ;;  %v1007_v36 = vlaneseq }
  0x60   :  { %910 = vmatpush.bf16.msra.mxu0 %v1523_v47  ;;  %v1831_v46 = vor.u32 %v2230_v40, %v1828_v41  ;;  %v2162_v47 = vld [vmem:[%s3359_s1 + $0x4c] sm:$0xf]  ;;  %v1524_v12 = vld [vmem:[%s3359_s1 + $0x18] sm:$0xf0] }
  0x61   :  { %923 = vmatpush.bf16.msra.mxu1 %v1651_v52  ;;  %v1684_v52 = vld [vmem:[%s3359_s1 + $0x158] sm:$0xf0]  ;;  %v2186_v13 = vld [vmem:[%s3359_s1 + $0x10c] sm:$0xf] }
  0x62   :  { %936 = vmatpush.bf16.msra.mxu2 %v1779_v53  ;;  %v2226_v53 = vld [vmem:[%s3359_s1 + $0x24c] sm:$0xf]  ;;  %v1652_v15 = vld [vmem:[%s3359_s1 + $0x118] sm:$0xf0] }
  0x63   :  { %949 = vmatpush.bf16.msra.mxu3 %v1907_v57  ;;  %911 = vmatmul.bf16.vlgmr.msra.gmra.mxu0 %v2615_v58  ;;  %v1940_v57 = vld [vmem:[%s3359_s1 + $0x358] sm:$0xf0]  ;;  %v2218_v16 = vld [vmem:[%s3359_s1 + $0x20c] sm:$0xf] }
  0x64   :  { %955 = vmatpush.bf16.msrb.mxu0 %v1639_v59  ;;  %924 = vmatmul.bf16.vlgmr.msra.gmra.mxu1 %v2617_v60  ;;  %v1559_v59 = vor.u32 %v2162_v47, %v1556_v48  ;;  %v1780_v17 = vld [vmem:[%s3359_s1 + $0x218] sm:$0xf0]  ;;  %v2250_v18 = vld [vmem:[%s3359_s1 + $0x30c] sm:$0xf] }
  0x65   :  { %968 = vmatpush.bf16.msrb.mxu1 %v1767_v61  ;;  %937 = vmatmul.bf16.vlgmr.msra.gmra.mxu2 %v2596_v51  ;;  %v1687_v61 = vor.u32 %v2194_v49, %v1684_v52  ;;  %v1908_v19 = vld [vmem:[%s3359_s1 + $0x318] sm:$0xf0] }
  0x66   :  { %981 = vmatpush.bf16.msrb.mxu2 %v1895_v62  ;;  %950 = vmatmul.bf16.vlgmr.msra.gmra.mxu3 %v2607_v55  ;;  %v1815_v62 = vor.u32 %v2226_v53, %v1812_v54  ;;  %v1911_v23 = vor.u32 %v2250_v18, %v1908_v19 }
  0x67   :  { %994 = vmatpush.bf16.msrb.mxu3 %v2023_v2  ;;  %v1943_v2 = vor.u32 %v2258_v56, %v1940_v57 }
  0x68   :  { %956 = vmatpush.bf16.msrb.mxu0 %v1623_v8  ;;  %v1543_v8 = vor.u32 %v2158_v63, %v1540_v0 }
  0x69   :  { %969 = vmatpush.bf16.msrb.mxu1 %v1751_v9  ;;  %v1671_v9 = vor.u32 %v2190_v1, %v1668_v3 }
  0x6a   :  { %982 = vmatpush.bf16.msrb.mxu2 %v1879_v10  ;;  %v1799_v10 = vor.u32 %v2222_v4, %v1796_v5 }
  0x6b   :  { %995 = vmatpush.bf16.msrb.mxu3 %v2007_v14  ;;  %v1927_v14 = vor.u32 %v2254_v6, %v1924_v7 }
  0x6c   :  { %957 = vmatpush.bf16.msrb.mxu0 %v1607_v20  ;;  %v1527_v20 = vor.u32 %v2154_v11, %v1524_v12 }
  0x6d   :  { %970 = vmatpush.bf16.msrb.mxu1 %v1735_v21  ;;  %v1655_v21 = vor.u32 %v2186_v13, %v1652_v15 }
  0x6e   :  { %983 = vmatpush.bf16.msrb.mxu2 %v1863_v22  ;;  %v1783_v22 = vor.u32 %v2218_v16, %v1780_v17 }
  0x6f   :  { %996 = vmatpush.bf16.msrb.mxu3 %v1991_v26 }
  0x70   :  { %958 = vmatpush.bf16.msrb.mxu0 %v1591_v32 }
  0x71   :  { %971 = vmatpush.bf16.msrb.mxu1 %v1719_v33 }
  0x72   :  { %984 = vmatpush.bf16.msrb.mxu2 %v1847_v34 }
  0x73   :  { %997 = vmatpush.bf16.msrb.mxu3 %v1975_v38  ;;  %v1008_v38 = vshrl.u32 %v1007_v36, 7 }
  0x74   :  { %959 = vmatpush.bf16.msrb.mxu0 %v1575_v44  ;;  %v2323_v44 = vmov 0.0  }
  0x75   :  { %972 = vmatpush.bf16.msrb.mxu1 %v1703_v45  ;;  %vm1009_vm0 = vcmp.lt.s32.totalorder %v1008_v38, 2 }
  0x76   :  { %985 = vmatpush.bf16.msrb.mxu2 %v1831_v46  ;;  %v3167_v45 = vsel %vm1009_vm0, 1.0, %v2323_v44 }
  0x77   :  { %998 = vmatpush.bf16.msrb.mxu3 %v1959_v50 }
  0x78   :  { %960 = vmatpush.bf16.msrb.mxu0 %v1559_v59 }
  0x79   :  { %973 = vmatpush.bf16.msrb.mxu1 %v1687_v61 }
  0x7a   :  { %986 = vmatpush.bf16.msrb.mxu2 %v1815_v62 }
  0x7b   :  { %999 = vmatpush.bf16.msrb.mxu3 %v1943_v2 }
  0x7c   :  { %961 = vmatpush.bf16.msrb.mxu0 %v1543_v8 }
  0x7d   :  { %974 = vmatpush.bf16.msrb.mxu1 %v1671_v9 }
  0x7e   :  { %987 = vmatpush.bf16.msrb.mxu2 %v1799_v10 }
  0x7f   :  { %1000 = vmatpush.bf16.msrb.mxu3 %v1927_v14 }
  0x80   :  { %962 = vmatpush.bf16.msrb.mxu0 %v1527_v20 }
  0x81   :  { %975 = vmatpush.bf16.msrb.mxu1 %v1655_v21 }
  0x82   :  { %988 = vmatpush.bf16.msrb.mxu2 %v1783_v22 }
  0x83   :  { %1001 = vmatpush.bf16.msrb.mxu3 %v1911_v23  ;;  %963 = vmatmul.bf16.vlgmr.msrb.gmra.mxu0 %v2615_v58 }
  0x84   :  { %976 = vmatmul.bf16.vlgmr.msrb.gmra.mxu1 %v2617_v60 }
  0x85   :  { %989 = vmatmul.bf16.vlgmr.msrb.gmra.mxu2 %v2596_v51 }
  0x86   :  { %1002 = vmatmul.bf16.vlgmr.msrb.gmra.mxu3 %v2607_v55 }
  0xa1   :  { %v821_v25 = vpop.f32.mrf.mxu1 }
  0xa4   :  { %v808_v24 = vpop.f32.mrf.mxu0 }
  0xa5   :  { %v822_v26 = vadd.f32 %v821_v25, %v808_v24 }
  0xa8   :  { %v834_v27 = vpop.f32.mrf.mxu2 }
  0xa9   :  { %v835_v28 = vadd.f32 %v834_v27, %v822_v26  ;;  %v847_v29 = vpop.f32.mrf.mxu3  ;;  %v823_v32 = vpop.f32.mrf.mxu1 }
  0xab   :  { %v3163_v30 = vadd.f32 %v847_v29, %v835_v28 }
  0xac   :  { %v810_v31 = vpop.f32.mrf.mxu0 }
  0xad   :  { %v1012_v48 = vmul.f32 %v3167_v45, %v3163_v30 }
  0xaf   :  { %v1016_v50 = vrot.slane %v1012_v48, 4 }
  0xb0   :  { %v836_v33 = vpop.f32.mrf.mxu2 }
  0xb1   :  { %v849_v34 = vpop.f32.mrf.mxu3  ;;  %v1017_v53 = vadd.f32 %v1016_v50, %v1012_v48 }
  0xb3   :  { %v1018_v61 = vrot.slane %v1017_v53, 2 }
  0xb5   :  { %v1019_v2 = vadd.f32 %v1018_v61, %v1017_v53 }
  0xb7   :  { %v1020_v8 = vrot.slane %v1019_v2, 1 }
  0xb9   :  { %v1021_v14 = vadd.f32 %v1020_v8, %v1019_v2 }
  0xbb   :  { %v3181_v18 = vmul.f32 0.5, %v1021_v14  ;;  %v2312_v14 = vld [vmem:[%s3362_s4 + $0xf8] sm:$0xff] }
  0xbc   :  { %1494 = vmatpush.bf16.msra.mxu3 %v2312_v14 }
  0xbd   :  { %v1044_v22 = vsub.f32 %v3163_v30, %v3181_v18 }
  0xbf   :  { %v1048_v26 = vmul.f32 %v3167_v45, %v1044_v22  ;;  %v2295_v22 = vld [vmem:[%s3362_s4 + $0x70] sm:$0xff] }
  0xc0   :  { %v860_v35 = vpop.f32.mrf.mxu0 }
  0xc1   :  { %v873_v58 = vpop.f32.mrf.mxu1  ;;  %v1052_v33 = vmul.f32 %v1048_v26, %v1048_v26 }
  0xc2   :  { %v874_v60 = vadd.f32 %v873_v58, %v860_v35 }
  0xc3   :  { %v1056_v36 = vrot.slane %v1052_v33, 4 }
  0xc8   :  { %v886_v37 = vpop.f32.mrf.mxu2  ;;  %v862_v39 = vpop.f32.mrf.mxu0 }
  0xc9   :  { %v899_v51 = vpop.f32.mrf.mxu3  ;;  %v887_v55 = vadd.f32 %v886_v37, %v874_v60  ;;  %v875_v40 = vpop.f32.mrf.mxu1 }
  0xcb   :  { %v3165_v41 = vadd.f32 %v899_v51, %v887_v55 }
  0xcd   :  { %v1013_v46 = vmul.f32 %v3167_v45, %v3165_v41 }
  0xcf   :  { %v1022_v47 = vrot.slane %v1013_v46, 4 }
  0xd0   :  { %v888_v42 = vpop.f32.mrf.mxu2 }
  0xd1   :  { %v901_v43 = vpop.f32.mrf.mxu3  ;;  %v1023_v49 = vadd.f32 %v1022_v47, %v1013_v46 }
  0xd2   :  { %v1057_v43 = vadd.f32 %v1056_v36, %v1052_v33  ;;  %v2293_v36 = vld [vmem:[%s3362_s4 + $0x60] sm:$0xff] }
  0xd3   :  { %v1024_v52 = vrot.slane %v1023_v49, 2 }
  0xd5   :  { %v1025_v57 = vadd.f32 %v1024_v52, %v1023_v49  ;;  %v1058_v49 = vrot.slane %v1057_v43, 2 }
  0xd7   :  { %v1026_v63 = vrot.slane %v1025_v57, 1 }
  0xd9   :  { %v1027_v6 = vadd.f32 %v1026_v63, %v1025_v57 }
  0xdb   :  { %v3177_v11 = vmul.f32 0.5, %v1027_v6 }
  0xdd   :  { %v1045_v16 = vsub.f32 %v3165_v41, %v3177_v11 }
  0xdf   :  { %v1049_v20 = vmul.f32 %v3167_v45, %v1045_v16 }
  0xe0   :  { %v912_v54 = vpop.f32.mrf.mxu0 }
  0xe1   :  { %v925_v56 = vpop.f32.mrf.mxu1  ;;  %v1053_v24 = vmul.f32 %v1049_v20, %v1049_v20 }
  0xe2   :  { %v926_v59 = vadd.f32 %v925_v56, %v912_v54 }
  0xe3   :  { %v1062_v31 = vrot.slane %v1053_v24, 4 }
  0xe5   :  { %v1063_v58 = vadd.f32 %v1062_v31, %v1053_v24  ;;  %v2311_v24 = vld [vmem:[%s3362_s4 + $0xf0] sm:$0xff]  ;;  %v2302_v31 = vld [vmem:[%s3362_s4 + $0xa8] sm:$0xff] }
  0xe6   :  { %1495 = vmatpush.bf16.msra.mxu3 %v2311_v24 }
  0xe7   :  { %v1064_v40 = vrot.slane %v1063_v58, 2 }
  0xe8   :  { %v938_v62 = vpop.f32.mrf.mxu2  ;;  %v914_v4 = vpop.f32.mrf.mxu0 }
  0xe9   :  { %v939_v0 = vadd.f32 %v938_v62, %v926_v59  ;;  %v951_v1 = vpop.f32.mrf.mxu3  ;;  %v927_v5 = vpop.f32.mrf.mxu1  ;;  %v1065_v47 = vadd.f32 %v1064_v40, %v1063_v58  ;;  %v1059_v59 = vadd.f32 %v1058_v49, %v1057_v43  ;;  %v2285_v58 = vld [vmem:[%s3362_s4 + $0x20] sm:$0xff]  ;;  %v2284_v40 = vld [vmem:[%s3362_s4 + $0x18] sm:$0xff] }
  0xea   :  { %v2292_v43 = vld [vmem:[%s3362_s4 + $0x58] sm:$0xff] }
  0xeb   :  { %v3173_v3 = vadd.f32 %v951_v1, %v939_v0  ;;  %v1066_v56 = vrot.slane %v1065_v47, 1  ;;  %v1060_v1 = vrot.slane %v1059_v59, 1 }
  0xed   :  { %v1014_v7 = vmul.f32 %v3167_v45, %v3173_v3  ;;  %v1067_v63 = vadd.f32 %v1066_v56, %v1065_v47  ;;  %v2291_v56 = vld [vmem:[%s3362_s4 + $0x50] sm:$0xff] }
  0xef   :  { %v1028_v9 = vrot.slane %v1014_v7, 4  ;;  %v1081_v5 = vmul.f32 0.5, %v1067_v63 }
  0xf0   :  { %v940_v10 = vpop.f32.mrf.mxu2 }
  0xf1   :  { %v1029_v12 = vadd.f32 %v1028_v9, %v1014_v7  ;;  %v953_v13 = vpop.f32.mrf.mxu3  ;;  %v1061_v7 = vadd.f32 %v1060_v1, %v1059_v59  ;;  %v2288_v10 = vld [vmem:[%s3362_s4 + $0x38] sm:$0xff]  ;;  %v2290_v1 = vld [vmem:[%s3362_s4 + $0x48] sm:$0xff] }
  0xf2   :  { %v2304_v13 = vld [vmem:[%s3362_s4 + $0xb8] sm:$0xff]  ;;  %1455 = vmatpush.bf16.msra.mxu0 %v2288_v10  ;;  %v2281_v10 = vld [vmem:[%s3362_s4] sm:$0xff] }
  0xf3   :  { %v1030_v15 = vrot.slane %v1029_v12, 2  ;;  %1481 = vmatpush.bf16.msra.mxu2 %v2304_v13  ;;  %v2297_v13 = vld [vmem:[%s3362_s4 + $0x80] sm:$0xff] }
  0xf5   :  { %v1031_v17 = vadd.f32 %v1030_v15, %v1029_v12  ;;  %v2296_v12 = vld [vmem:[%s3362_s4 + $0x78] sm:$0xff]  ;;  %v3212_v15 = vadd.f32 1e-05, %v1081_v5  ;;  %v2306_v5 = vld [vmem:[%s3362_s4 + $0xc8] sm:$0xff] }
  0xf6   :  { %1468 = vmatpush.bf16.msra.mxu1 %v2296_v12  ;;  %v2289_v12 = vld [vmem:[%s3362_s4 + $0x40] sm:$0xff] }
  0xf7   :  { %v1032_v19 = vrot.slane %v1031_v17, 1  ;;  %2315 = vrsqrt.f32 %v3212_v15  ;;  %vm1105_vm2 = vweird.f32 %v3212_v15 }
  0xf9   :  { %v1033_v21 = vadd.f32 %v1032_v19, %v1031_v17  ;;  %v1080_v17 = vmul.f32 0.5, %v1061_v7 }
  0xfa   :  { %1469 = vmatpush.bf16.msra.mxu1 %v2295_v22 }
  0xfb   :  { %v3186_v23 = vmul.f32 0.5, %v1033_v21  ;;  %v2287_v21 = vld [vmem:[%s3362_s4 + $0x30] sm:$0xff]  ;;  %v3230_v26 = vadd.f32 1e-05, %v1080_v17  ;;  %v2305_v17 = vld [vmem:[%s3362_s4 + $0xc0] sm:$0xff] }
  0xfc   :  { %1456 = vmatpush.bf16.msra.mxu0 %v2287_v21 }
  0xfd   :  { %v1046_v25 = vsub.f32 %v3173_v3, %v3186_v23  ;;  %vm1095_vm11 = vweird.f32 %v3230_v26 }
  0xff   :  { %v1050_v27 = vmul.f32 %v3167_v45, %v1046_v25 }
 0x100   :  { %v964_v28 = vpop.f32.mrf.mxu0 }
 0x101   :  { %v977_v29 = vpop.f32.mrf.mxu1  ;;  %v1054_v32 = vmul.f32 %v1050_v27, %v1050_v27 }
 0x102   :  { %v978_v35 = vadd.f32 %v977_v29, %v964_v28  ;;  %v2286_v28 = vld [vmem:[%s3362_s4 + $0x28] sm:$0xff] }
 0x103   :  { %v1068_v34 = vrot.slane %v1054_v32, 4  ;;  %v2294_v29 = vld [vmem:[%s3362_s4 + $0x68] sm:$0xff]  ;;  %1457 = vmatpush.bf16.msra.mxu0 %v2286_v28 }
 0x104   :  { %1470 = vmatpush.bf16.msra.mxu1 %v2294_v29 }
 0x105   :  { %v1069_v37 = vadd.f32 %v1068_v34, %v1054_v32  ;;  %v2310_v32 = vld [vmem:[%s3362_s4 + $0xe8] sm:$0xff]  ;;  %v3246_v34 = vpop.eup %2315 }
 0x106   :  { %1496 = vmatpush.bf16.msra.mxu3 %v2310_v32  ;;  %vm1106_vm1 = vweird.f32 %v3246_v34 }
 0x107   :  { %v1070_v44 = vrot.slane %v1069_v37, 2  ;;  %1458 = vmatpush.bf16.msra.mxu0 %v2285_v58  ;;  %vm1107_vm4 = vmor %vm1105_vm2, %vm1106_vm1 }
 0x108   :  { %v990_v60 = vpop.f32.mrf.mxu2  ;;  %v966_v55 = vpop.f32.mrf.mxu0  ;;  %1471 = vmatpush.bf16.msra.mxu1 %v2293_v36 }
 0x109   :  { %v991_v51 = vadd.f32 %v990_v60, %v978_v35  ;;  %v1003_v38 = vpop.f32.mrf.mxu3  ;;  %v979_v39 = vpop.f32.mrf.mxu1  ;;  %v1071_v52 = vadd.f32 %v1070_v44, %v1069_v37  ;;  %v2301_v60 = vld [vmem:[%s3362_s4 + $0xa0] sm:$0xff]  ;;  %v1100_v55 = vmul.f32 %v3246_v34, %v3212_v15  ;;  %v2300_v44 = vld [vmem:[%s3362_s4 + $0x98] sm:$0xff] }
 0x10a   :  { %v2309_v37 = vld [vmem:[%s3362_s4 + $0xe0] sm:$0xff] }
 0x10b   :  { %v3192_v42 = vadd.f32 %v1003_v38, %v991_v51  ;;  %v1072_v61 = vrot.slane %v1071_v52, 1  ;;  %1497 = vmatpush.bf16.msra.mxu3 %v2309_v37  ;;  %1459 = vmatpush.bf16.msra.mxu0 %v2284_v40 }
 0x10c   :  { %1472 = vmatpush.bf16.msra.mxu1 %v2292_v43 }
 0x10d   :  { %v1015_v46 = vmul.f32 %v3167_v45, %v3192_v42  ;;  %v1073_v2 = vadd.f32 %v1072_v61, %v1071_v52  ;;  %v2307_v61 = vld [vmem:[%s3362_s4 + $0xd0] sm:$0xff] }
 0x10f   :  { %v1034_v48 = vrot.slane %v1015_v46, 4  ;;  %v1082_v8 = vmul.f32 0.5, %v1073_v2  ;;  %v2298_v2 = vld [vmem:[%s3362_s4 + $0x88] sm:$0xff] }
 0x110   :  { %v992_v50 = vpop.f32.mrf.mxu2  ;;  %1473 = vmatpush.bf16.msra.mxu1 %v2291_v56 }
 0x111   :  { %v1035_v53 = vadd.f32 %v1034_v48, %v1015_v46  ;;  %v1005_v54 = vpop.f32.mrf.mxu3  ;;  %v3215_v19 = vadd.f32 1e-05, %v1082_v8  ;;  %v2308_v48 = vld [vmem:[%s3362_s4 + $0xd8] sm:$0xff]  ;;  %v1101_v50 = vmul.f32 %v3246_v34, %v1100_v55 }
 0x112   :  { %1498 = vmatpush.bf16.msra.mxu3 %v2308_v48  ;;  %v2283_v54 = vld [vmem:[%s3362_s4 + $0x10] sm:$0xff] }
 0x113   :  { %v1036_v57 = vrot.slane %v1035_v53, 2  ;;  %2317 = vrsqrt.f32 %v3215_v19  ;;  %1460 = vmatpush.bf16.msra.mxu0 %v2283_v54  ;;  %vm1115_vm5 = vweird.f32 %v3215_v19 }
 0x114   :  { %2319 = vrsqrt.f32 %v3230_v26  ;;  %1474 = vmatpush.bf16.msra.mxu1 %v2290_v1 }
 0x115   :  { %v1037_v62 = vadd.f32 %v1036_v57, %v1035_v53  ;;  %v2299_v57 = vld [vmem:[%s3362_s4 + $0x90] sm:$0xff] }
 0x116   :  { %1499 = vmatpush.bf16.msra.mxu3 %v2307_v61 }
 0x117   :  { %v1038_v0 = vrot.slane %v1037_v62, 1 }
 0x118   :  { %1475 = vmatpush.bf16.msra.mxu1 %v2289_v12 }
 0x119   :  { %v1039_v4 = vadd.f32 %v1038_v0, %v1037_v62  ;;  %v3260_v51 = vpop.eup %2317  ;;  %v1102_v62 = vmul.f32 0.5, %v1101_v50  ;;  %v2282_v0 = vld [vmem:[%s3362_s4 + $0x8] sm:$0xff] }
 0x11a   :  { %v3273_v46 = vpop.eup %2319  ;;  %v1110_v47 = vmul.f32 %v3260_v51, %v3215_v19  ;;  %1461 = vmatpush.bf16.msra.mxu0 %v2282_v0  ;;  %1500 = vmatpush.bf16.msra.mxu3 %v2306_v5  ;;  %vm1116_vm3 = vweird.f32 %v3260_v51 }
 0x11b   :  { %v3196_v6 = vmul.f32 0.5, %v1039_v4  ;;  %v1090_v52 = vmul.f32 %v3273_v46, %v3230_v26  ;;  %v1103_v7 = vsub.f32 1.5, %v1102_v62  ;;  %vm1096_vm7 = vweird.f32 %v3273_v46  ;;  %vm1117_vm8 = vmor %vm1115_vm5, %vm1116_vm3 }
 0x11c   :  { %v1111_v59 = vmul.f32 %v3260_v51, %v1110_v47  ;;  %vm1097_vm14 = vmor %vm1095_vm11, %vm1096_vm7 }
 0x11d   :  { %v1047_v9 = vsub.f32 %v3192_v42, %v3196_v6  ;;  %v1091_v63 = vmul.f32 %v3273_v46, %v1090_v52 }
 0x11e   :  { %v1112_v4 = vmul.f32 0.5, %v1111_v59  ;;  %1462 = vmatpush.bf16.msra.mxu0 %v2281_v10  ;;  %1501 = vmatpush.bf16.msra.mxu3 %v2305_v17 }
 0x11f   :  { %v1051_v16 = vmul.f32 %v3167_v45, %v1047_v9  ;;  %v2303_v45 = vld [vmem:[%s3362_s4 + $0xb0] sm:$0xff]  ;;  %v1092_v9 = vmul.f32 0.5, %v1091_v63 }
 0x120   :  { %1482 = vmatpush.bf16.msra.mxu2 %v2303_v45  ;;  %v1113_v14 = vsub.f32 1.5, %v1112_v4 }
 0x121   :  { %v1055_v20 = vmul.f32 %v1051_v16, %v1051_v16  ;;  %v1093_v22 = vsub.f32 1.5, %v1092_v9 }
 0x122   :  { %v1114_v45 = vmul.f32 %v3260_v51, %v1113_v14 }
 0x123   :  { %v1074_v25 = vrot.slane %v1055_v20, 4  ;;  %v1094_v28 = vmul.f32 %v3273_v46, %v1093_v22 }
 0x124   :  { %1483 = vmatpush.bf16.msra.mxu2 %v2302_v31  ;;  %v1118_v29 = vsel %vm1117_vm8, %v3260_v51, %v1114_v45 }
 0x125   :  { %v1075_v27 = vadd.f32 %v1074_v25, %v1055_v20  ;;  %v1104_v20 = vmul.f32 %v3246_v34, %v1103_v7  ;;  %v1134_v19 = vrot.slane %v1118_v29, 6 }
 0x127   :  { %v1076_v33 = vrot.slane %v1075_v27, 2  ;;  %v1108_v25 = vsel %vm1107_vm4, %v3246_v34, %v1104_v20  ;;  %v1084_v34 = vld [vmem:[%s3363_s2] sm:$0xf] }
 0x128   :  { %1484 = vmatpush.bf16.msra.mxu2 %v2301_v60  ;;  %v1133_v31 = vrot.slane %v1108_v25, 7 }
 0x129   :  { %v1077_v35 = vadd.f32 %v1076_v33, %v1075_v27 }
 0x12b   :  { %v1078_v38 = vrot.slane %v1077_v35, 1 }
 0x12c   :  { %1485 = vmatpush.bf16.msra.mxu2 %v2300_v44 }
 0x12d   :  { %v1079_v39 = vadd.f32 %v1078_v38, %v1077_v35  ;;  %v1098_v35 = vsel %vm1097_vm14, %v3273_v46, %v1094_v28 }
 0x12e   :  { %v1137_v58 = vsel %vm1136_vm12, %v1098_v35, %v1133_v31 }
 0x12f   :  { %v1083_v49 = vmul.f32 0.5, %v1079_v39 }
 0x130   :  { %1486 = vmatpush.bf16.msra.mxu2 %v2299_v57 }
 0x131   :  { %v1088_v53 = vadd.f32 1e-05, %v1083_v49  ;;  %v1144_v49 = vld [vmem:[%s3364_s3] sm:$0xf] }
 0x133   :  { %2321 = vrsqrt.f32 %v1088_v53  ;;  %vm1125_vm9 = vweird.f32 %v1088_v53 }
 0x134   :  { %1487 = vmatpush.bf16.msra.mxu2 %v2298_v2 }
 0x138   :  { %1488 = vmatpush.bf16.msra.mxu2 %v2297_v13 }
 0x139   :  { %v2322_v8 = vpop.eup %2321 }
 0x13a   :  { %v1120_v16 = vmul.f32 %v2322_v8, %v1088_v53  ;;  %vm1126_vm6 = vweird.f32 %v2322_v8 }
 0x13b   :  { %vm1127_vm10 = vmor %vm1125_vm9, %vm1126_vm6 }
 0x13c   :  { %v1121_v21 = vmul.f32 %v2322_v8, %v1120_v16 }
 0x13e   :  { %v1122_v24 = vmul.f32 0.5, %v1121_v21 }
 0x140   :  { %v1123_v27 = vsub.f32 1.5, %v1122_v24 }
 0x142   :  { %v1124_v15 = vmul.f32 %v2322_v8, %v1123_v27 }
 0x144   :  { %v1128_v32 = vsel %vm1127_vm10, %v2322_v8, %v1124_v15 }
 0x145   :  { %v1135_v33 = vrot.slane %v1128_v32, 5 }
 0x147   :  { %v1139_v36 = vsel %vm1138_vm13, %v1134_v19, %v1135_v33 }
 0x148   :  { %v1141_v60 = vsel %vm1140_vm15, %v1137_v58, %v1139_v36 }
 0x149   :  { %v1143_v26 = vmul.f32 %v1141_v60, %v1084_v34 }
 0x14b   :  { %v1146_v37 = vperm.slane %v1143_v26, 0  ;;  %v1147_v51 = vperm.slane %v1143_v26, 1  ;;  %v1148_v38 = vperm.slane %v1143_v26, 2  ;;  %v1149_v55 = vperm.slane %v1143_v26, 3 }
 0x14d   :  { %v1155_v39 = vmul.f32 %v1147_v51, %v3177_v11  ;;  %v1156_v40 = vmul.f32 %v1148_v38, %v3186_v23  ;;  %v1157_v43 = vmul.f32 %v1149_v55, %v3196_v6  ;;  %v1154_v44 = vmul.f32 %v1146_v37, %v3181_v18 }
 0x14e   :  { %v1173_v23 = vmul.f32 %v1149_v55, %v3192_v42  ;;  %v1170_v6 = vmul.f32 %v1146_v37, %v3163_v30  ;;  %v1171_v18 = vmul.f32 %v1147_v51, %v3165_v41  ;;  %v1172_v54 = vmul.f32 %v1148_v38, %v3173_v3  ;;  %v2314_v41 = vld [vmem:[%s3361_s5] ss:$0 sm:$0xff] }
 0x14f   :  { %v1162_v46 = vrot.slane %v1155_v39, 7  ;;  %v1163_v47 = vrot.slane %v1156_v40, 6  ;;  %v1164_v48 = vrot.slane %v1157_v43, 5 }
 0x151   :  { %v1165_v50 = vsel %vm1136_vm12, %v1154_v44, %v1162_v46  ;;  %v1166_v52 = vsel %vm1138_vm13, %v1163_v47, %v1164_v48 }
 0x152   :  { %v1167_v53 = vsel %vm1140_vm15, %v1165_v50, %v1166_v52 }
 0x153   :  { %v1169_v11 = vsub.f32 %v1144_v49, %v1167_v53 }
 0x155   :  { %v1178_v56 = vperm.slane %v1169_v11, 3  ;;  %v1175_v57 = vperm.slane %v1169_v11, 0  ;;  %v1176_v59 = vperm.slane %v1169_v11, 1  ;;  %v1177_v61 = vperm.slane %v1169_v11, 2 }
 0x157   :  { %v1186_v62 = vadd.f32 %v1178_v56, %v1173_v23  ;;  %v1183_v63 = vadd.f32 %v1175_v57, %v1170_v6  ;;  %v1184_v0 = vadd.f32 %v1176_v59, %v1171_v18  ;;  %v1185_v1 = vadd.f32 %v1177_v61, %v1172_v54 }
 0x159   :  { %v1190_v2 = vmax.f32 %v1186_v62, 0.0  ;;  %v1187_v4 = vmax.f32 %v1183_v63, 0.0  ;;  %v1188_v5 = vmax.f32 %v1184_v0, 0.0  ;;  %v1189_v7 = vmax.f32 %v1185_v1, 0.0 }
 0x15b   :  { %v1191_v8 = vpack.c.bf16 %v1187_v4, %v1187_v4  ;;  %v1192_v42 = vpack.c.bf16 %v1188_v5, %v1188_v5  ;;  %v1193_v9 = vpack.c.bf16 %v1189_v7, %v1189_v7  ;;  %v1194_v30 = vpack.c.bf16 %v1190_v2, %v1190_v2 }
 0x15d   :  { %1463 = vmatmul.bf16.vlgmr.msra.gmra.mxu0 %v1191_v8  ;;  %1476 = vmatmul.bf16.vlgmr.msra.gmra.mxu1 %v1192_v42 }
 0x15e   :  { %1489 = vmatmul.bf16.vlgmr.msra.gmra.mxu2 %v1193_v9  ;;  %1502 = vmatmul.bf16.vlgmr.msra.gmra.mxu3 %v1194_v30 }
 0x1da   :  { %v1464_v3 = vpop.f32.mrf.mxu0  ;;  %v1477_v10 = vpop.f32.mrf.mxu1 }
 0x1db   :  { %v1465_v12 = vadd.f32 %v2314_v41, %v1464_v3 }
 0x1dd   :  { %v1478_v13 = vadd.f32 %v1477_v10, %v1465_v12 }
 0x1e1   :  { %v1490_v14 = vpop.f32.mrf.mxu2  ;;  %v1503_v16 = vpop.f32.mrf.mxu3 }
 0x1e2   :  { %v1491_v17 = vadd.f32 %v1490_v14, %v1478_v13  ;;  %v1466_v20 = vpop.f32.mrf.mxu0  ;;  %v1479_v21 = vpop.f32.mrf.mxu1 }
 0x1e4   :  { %v1504_v22 = vadd.f32 %v1503_v16, %v1491_v17 }
 0x1e6   :  { %1507 = vst [vmem:[%s3365_s6] sm:$0xff] %v1504_v22 }
 0x1e9   :  { %v1492_v45 = vpop.f32.mrf.mxu2  ;;  %v1505_v24 = vpop.f32.mrf.mxu3 }

</bundles_post_ra>
